<compile_context>
chip_gen: v5e
topology: v5e:2x2
jax: 0.10.0
libtpu: 0.0.40
codegen_flags: <defaults>
</compile_context>

<pallas_src>
import functools

import jax
import jax.numpy as jnp
from jax.experimental import pallas as pl
from jax.experimental.pallas import tpu as pltpu


def _class_attn_fused_kernel(cls_ref, pch_ref, wq_ref, wkv_ref, wp_ref, bp_ref,
                             o_ref, *, num_heads, scale):
    """Fused Class_Attention for one block of Bt batch elements.

    cls_ref: (Bt, Nq, C)   f32   query tokens
    pch_ref: (Bt, Np, C)   f32   extra key/value tokens
    wq_ref:  (C, C)        bf16  Wq^T
    wkv_ref: (C, 2C)       bf16  [Wk^T | Wv^T]
    wp_ref:  (H, d, C)     bf16  Wproj^T split per head
    bp_ref:  (1, C)        f32   projection bias
    o_ref:   (Bt, Nq, C)         final projected output
    """
    f32 = jnp.float32
    Bt, Nq, C = cls_ref.shape
    Np = pch_ref.shape[1]
    Nk = Nq + Np
    d = C // num_heads
    mm_dtype = wq_ref.dtype            # bf16 MXU inputs, f32 accumulation

    cls3 = cls_ref[...]                                     # (Bt, Nq, C)
    pch3 = pch_ref[...]                                     # (Bt, Np, C)
    # Token concat stays in VMEM (no HBM round trip); Nq, Np are 8-aligned.
    x3 = jnp.concatenate([cls3, pch3], axis=1)              # (Bt, Nk, C)

    # Full-width projections with M = Bt*N rows: one MXU matmul for all heads
    # and all batch elements of the block.
    cls2 = cls3.reshape(Bt * Nq, C)
    x2 = x3.reshape(Bt * Nk, C)
    q2 = jnp.dot(cls2.astype(mm_dtype), wq_ref[...],
                 preferred_element_type=f32) * scale         # (Bt*Nq, C)
    kv2 = jnp.dot(x2.astype(mm_dtype), wkv_ref[...],
                  preferred_element_type=f32)                # (Bt*Nk, 2C) lane-dense

    q3 = q2.reshape(Bt, Nq, C)
    kv3 = kv2.reshape(Bt, Nk, 2 * C)

    # Per-head attention (static unrolled loop); output projection folded in per
    # head:  y += ctx_h @ Wproj^T[h*d:(h+1)*d, :]  -> no ctx scratch, one store.
    y = None
    for h in range(num_heads):
        lo = h * d
        qh = q3[:, :, lo:lo + d]                             # (Bt, Nq, d)
        kh = kv3[:, :, lo:lo + d]                            # (Bt, Nk, d)
        vh = kv3[:, :, C + lo:C + lo + d]                    # (Bt, Nk, d)

        s = jnp.einsum('bqd,bkd->bqk', qh, kh,
                       preferred_element_type=f32)           # (Bt, Nq, Nk)
        s = s - jnp.max(s, axis=-1, keepdims=True)
        p = jnp.exp(s)
        p = p / jnp.sum(p, axis=-1, keepdims=True)           # exact divide, f32

        ctx = jnp.einsum('bqk,bkd->bqd', p, vh,
                         preferred_element_type=f32)         # (Bt, Nq, d)
        yh = jnp.dot(ctx.reshape(Bt * Nq, d).astype(mm_dtype), wp_ref[h],
                     preferred_element_type=f32)             # (Bt*Nq, C)
        y = yh if y is None else y + yh

    y = y + bp_ref[...]                                      # bias broadcast
    o_ref[...] = y.reshape(Bt, Nq, C).astype(o_ref.dtype)


def _choose_bt(B, Nq, target_rows=128):
    """Batch-tile size: fill the MXU sublane dim (Bt*Nq ~ target_rows) while
    keeping >=2 grid steps when the batch allows it (v7x has 2 TensorCores)."""
    want = max(1, -(-target_rows // Nq))
    divs = [t for t in range(1, B + 1) if B % t == 0]
    two_step = [t for t in divs if t <= want and B // t >= 2]
    if two_step and two_step[-1] * Nq >= target_rows:
        return two_step[-1]
    for t in divs:
        if t * Nq >= target_rows:
            return t
    return B


def class_attention(cls, pch, wq, wk, wv, wproj, bproj, num_heads):
    B, Hp, Wp, C = cls.shape
    Hpp = pch.shape[1]
    d = C // num_heads
    assert d * num_heads == C
    scale = d ** (-0.5)
    Nq = Hp * Wp
    Np = Hpp * Wp

    cls_f = cls.reshape(B, Nq, C)
    pch_f = pch.reshape(B, Np, C)

    # Pre-transposed weights (x @ W^T -> x @ W_t with W_t = W.T), Wk/Wv fused,
    # Wproj^T pre-split per head; all stored bf16 for the MXU.
    mm_dtype = jnp.bfloat16
    wq_t = wq.T.astype(mm_dtype)                                     # (C, C)
    wkv_t = jnp.concatenate([wk.T, wv.T], axis=1).astype(mm_dtype)   # (C, 2C)
    wp_t = wproj.T.reshape(num_heads, d, C).astype(mm_dtype)         # (H, d, C)
    bp = bproj.reshape(1, C).astype(jnp.float32)

    Bt = _choose_bt(B, Nq)
    grid = (B // Bt,)

    out = pl.pallas_call(
        functools.partial(_class_attn_fused_kernel,
                          num_heads=num_heads, scale=scale),
        out_shape=jax.ShapeDtypeStruct((B, Nq, C), cls.dtype),
        grid=grid,
        in_specs=[
            pl.BlockSpec((Bt, Nq, C), lambda b: (b, 0, 0)),          # cls tokens
            pl.BlockSpec((Bt, Np, C), lambda b: (b, 0, 0)),          # pch tokens
            pl.BlockSpec((C, C), lambda b: (0, 0)),                  # Wq^T   (resident)
            pl.BlockSpec((C, 2 * C), lambda b: (0, 0)),              # [Wk|Wv]^T (resident)
            pl.BlockSpec((num_heads, d, C), lambda b: (0, 0, 0)),    # Wproj^T per head
            pl.BlockSpec((1, C), lambda b: (0, 0)),                  # proj bias
        ],
        out_specs=pl.BlockSpec((Bt, Nq, C), lambda b: (b, 0, 0)),
        compiler_params=pltpu.CompilerParams(
            dimension_semantics=("parallel",),
            vmem_limit_bytes=32 * 1024 * 1024,
        ),
    )(cls_f, pch_f, wq_t, wkv_t, wp_t, bp)

    # Free reshape (no transpose): heads already packed along the channel axis.
    return out.reshape(B, Hp, Wp, C)


def reference(cls, pch, wq, wk, wv, wproj, bproj, num_heads):
    """Pure-JAX f32 reference mirroring the PyTorch forward exactly."""
    B, Hp, Wp, C = cls.shape
    d = C // num_heads
    scale = d ** (-0.5)
    x = jnp.concatenate([cls, pch], axis=1)
    q = (cls.reshape(B, Hp * Wp, C) @ wq.T).reshape(B, -1, num_heads, d)
    q = q.transpose(2, 0, 1, 3) * scale
    k = (x.reshape(B, -1, C) @ wk.T).reshape(B, -1, num_heads, d).transpose(2, 0, 1, 3)
    v = (x.reshape(B, -1, C) @ wv.T).reshape(B, -1, num_heads, d).transpose(2, 0, 1, 3)
    attn = jax.nn.softmax(q @ k.transpose(0, 1, 3, 2), axis=-1)
    xc = attn @ v                               # (H, B, Nq, d)
    xc = xc.transpose(1, 2, 0, 3).reshape(B, Hp, Wp, C)
    return xc @ wproj.T + bproj


if __name__ == "__main__":
    key = jax.random.PRNGKey(0)
    B, Hp, Wp, C = 2, 2, 4, 64     # cls:  (B, Hp, Wp, C)
    Hp_pch = 4                     # pch:  (B, Hp_pch, Wp, C)
    num_heads = 8                  # head_dim = 8

    k1, k2, k3, k4, k5, k6, k7 = jax.random.split(key, 7)
    cls = jax.random.normal(k1, (B, Hp, Wp, C), jnp.float32)
    pch = jax.random.normal(k2, (B, Hp_pch, Wp, C), jnp.float32)
    # Deterministic synthetic parameters (PyTorch Linear layout: (out, in)).
    wq = jax.random.normal(k3, (C, C), jnp.float32) * 0.05
    wk = jax.random.normal(k4, (C, C), jnp.float32) * 0.05
    wv = jax.random.normal(k5, (C, C), jnp.float32) * 0.05
    wproj = jax.random.normal(k6, (C, C), jnp.float32) * 0.05
    bproj = jax.random.normal(k7, (C,), jnp.float32) * 0.05

    out = class_attention(cls, pch, wq, wk, wv, wproj, bproj, num_heads)
    out = jax.block_until_ready(out)

    ref = reference(cls, pch, wq, wk, wv, wproj, bproj, num_heads)
    assert out.shape == (B, Hp, Wp, C)
    # Tolerance accounts for bf16 MXU inputs on the projection matmuls
    # (f32 accumulation, f32 softmax/elementwise math).
    err = jnp.max(jnp.abs(out - ref))
    assert jnp.allclose(out, ref, atol=2e-2, rtol=2e-2), f"mismatch vs reference (max |err|={err})"

    print("KERNEL_OK")
</pallas_src>

<mosaic_0001>
module attributes {stable_mosaic.version = 11 : i64} {
  func.func @_class_attn_fused_kernel(%arg0: i32, %arg1: memref<2x8x64xf32, #tpu.memory_space<vmem>>, %arg2: memref<2x16x64xf32, #tpu.memory_space<vmem>>, %arg3: memref<64x64xbf16, #tpu.memory_space<vmem>>, %arg4: memref<64x128xbf16, #tpu.memory_space<vmem>>, %arg5: memref<8x8x64xbf16, #tpu.memory_space<vmem>>, %arg6: memref<1x64xf32, #tpu.memory_space<vmem>>, %arg7: memref<2x8x64xf32, #tpu.memory_space<vmem>>) attributes {dimension_semantics = [#tpu.dimension_semantics<parallel>], iteration_bounds = array<i64: 1>, scalar_prefetch = 0 : i64, scratch_operands = 0 : i64, tpu.core_type = #tpu.core_type<tc>, window_params = [{transform_indices = @transform_0, window_bounds = array<i64: 2, 8, 64>}, {transform_indices = @transform_1, window_bounds = array<i64: 2, 16, 64>}, {pipeline_mode = #tpu.pipeline_mode<synchronous>, transform_indices = @transform_2, window_bounds = array<i64: 64, 64>}, {pipeline_mode = #tpu.pipeline_mode<synchronous>, transform_indices = @transform_3, window_bounds = array<i64: 64, 128>}, {pipeline_mode = #tpu.pipeline_mode<synchronous>, transform_indices = @transform_4, window_bounds = array<i64: 8, 8, 64>}, {pipeline_mode = #tpu.pipeline_mode<synchronous>, transform_indices = @transform_5, window_bounds = array<i64: 1, 64>}, {transform_indices = @transform_6, window_bounds = array<i64: 2, 8, 64>}]} {
    %c0 = arith.constant 0 : index
    %c0_0 = arith.constant 0 : index
    %c0_1 = arith.constant 0 : index
    %0 = vector.load %arg1[%c0, %c0_0, %c0_1] : memref<2x8x64xf32, #tpu.memory_space<vmem>>, vector<2x8x64xf32>
    %c0_2 = arith.constant 0 : index
    %c0_3 = arith.constant 0 : index
    %c0_4 = arith.constant 0 : index
    %1 = vector.load %arg2[%c0_2, %c0_3, %c0_4] : memref<2x16x64xf32, #tpu.memory_space<vmem>>, vector<2x16x64xf32>
    %2 = tpu.concatenate %0, %1 in 1 : vector<2x8x64xf32>, vector<2x16x64xf32> -> vector<2x24x64xf32>
    %3 = vector.shape_cast %0 : vector<2x8x64xf32> to vector<16x64xf32>
    %4 = vector.shape_cast %2 : vector<2x24x64xf32> to vector<48x64xf32>
    %5 = arith.truncf %3 : vector<16x64xf32> to vector<16x64xbf16>
    %c0_5 = arith.constant 0 : index
    %c0_6 = arith.constant 0 : index
    %6 = vector.load %arg3[%c0_5, %c0_6] : memref<64x64xbf16, #tpu.memory_space<vmem>>, vector<64x64xbf16>
    %cst = arith.constant dense<0.000000e+00> : vector<16x64xf32>
    %7 = tpu.matmul %5, %6, %cst {dimension_numbers = #tpu.dot_dimension_numbers<[1], [0], [0], [1], [0, 0, 1, 1], [], []>} : vector<16x64xbf16>, vector<64x64xbf16>, vector<16x64xf32> -> vector<16x64xf32>
    %cst_7 = arith.constant 0.353553385 : f32
    %8 = vector.broadcast %cst_7 : f32 to vector<16x64xf32>
    %9 = arith.mulf %7, %8 : vector<16x64xf32>
    %10 = arith.truncf %4 : vector<48x64xf32> to vector<48x64xbf16>
    %c0_8 = arith.constant 0 : index
    %c0_9 = arith.constant 0 : index
    %11 = vector.load %arg4[%c0_8, %c0_9] : memref<64x128xbf16, #tpu.memory_space<vmem>>, vector<64x128xbf16>
    %cst_10 = arith.constant dense<0.000000e+00> : vector<48x128xf32>
    %12 = tpu.matmul %10, %11, %cst_10 {dimension_numbers = #tpu.dot_dimension_numbers<[1], [0], [0], [1], [0, 0, 1, 1], [], []>} : vector<48x64xbf16>, vector<64x128xbf16>, vector<48x128xf32> -> vector<48x128xf32>
    %13 = vector.shape_cast %9 : vector<16x64xf32> to vector<2x8x64xf32>
    %14 = vector.shape_cast %12 : vector<48x128xf32> to vector<2x24x128xf32>
    %15 = vector.extract_strided_slice %13 {offsets = [0, 0, 0], sizes = [2, 8, 8], strides = [1, 1, 1]} : vector<2x8x64xf32> to vector<2x8x8xf32>
    %16 = vector.extract_strided_slice %14 {offsets = [0, 0, 0], sizes = [2, 24, 8], strides = [1, 1, 1]} : vector<2x24x128xf32> to vector<2x24x8xf32>
    %17 = vector.extract_strided_slice %14 {offsets = [0, 0, 64], sizes = [2, 24, 8], strides = [1, 1, 1]} : vector<2x24x128xf32> to vector<2x24x8xf32>
    "tpu.trace_start"() <{level = 10 : i32, message = "bqd,bkd->bqk"}> : () -> ()
    %cst_11 = arith.constant dense<0.000000e+00> : vector<2x8x24xf32>
    %18 = tpu.matmul %15, %16, %cst_11 {dimension_numbers = #tpu.dot_dimension_numbers<[2], [2], [1], [1], [0, 0, 0, 1, 1, 1], [0], [0]>} : vector<2x8x8xf32>, vector<2x24x8xf32>, vector<2x8x24xf32> -> vector<2x8x24xf32>
    "tpu.trace_stop"() : () -> ()
    %cst_12 = arith.constant dense<0xFF800000> : vector<2x8xf32>
    %19 = vector.multi_reduction <maximumf>, %18, %cst_12 [2] : vector<2x8x24xf32> to vector<2x8xf32>
    %20 = vector.shape_cast %19 : vector<2x8xf32> to vector<2x8x1xf32>
    %21 = vector.broadcast %20 : vector<2x8x1xf32> to vector<2x8x24xf32>
    %22 = arith.subf %18, %21 : vector<2x8x24xf32>
    %23 = math.exp %22 : vector<2x8x24xf32>
    %cst_13 = arith.constant dense<0.000000e+00> : vector<2x8xf32>
    %24 = vector.multi_reduction <add>, %23, %cst_13 [2] : vector<2x8x24xf32> to vector<2x8xf32>
    %25 = vector.shape_cast %24 : vector<2x8xf32> to vector<2x8x1xf32>
    %26 = vector.broadcast %25 : vector<2x8x1xf32> to vector<2x8x24xf32>
    %27 = arith.divf %23, %26 : vector<2x8x24xf32>
    "tpu.trace_start"() <{level = 10 : i32, message = "bqk,bkd->bqd"}> : () -> ()
    %cst_14 = arith.constant dense<0.000000e+00> : vector<2x8x8xf32>
    %28 = tpu.matmul %27, %17, %cst_14 {dimension_numbers = #tpu.dot_dimension_numbers<[2], [1], [1], [2], [0, 0, 0, 1, 1, 2], [0], [0]>} : vector<2x8x24xf32>, vector<2x24x8xf32>, vector<2x8x8xf32> -> vector<2x8x8xf32>
    "tpu.trace_stop"() : () -> ()
    %29 = vector.shape_cast %28 : vector<2x8x8xf32> to vector<16x8xf32>
    %30 = arith.truncf %29 : vector<16x8xf32> to vector<16x8xbf16>
    %c0_15 = arith.constant 0 : index
    %c0_16 = arith.constant 0 : index
    %c0_17 = arith.constant 0 : index
    %31 = vector.load %arg5[%c0_15, %c0_16, %c0_17] : memref<8x8x64xbf16, #tpu.memory_space<vmem>>, vector<1x8x64xbf16>
    %32 = vector.shape_cast %31 : vector<1x8x64xbf16> to vector<8x64xbf16>
    %cst_18 = arith.constant dense<0.000000e+00> : vector<16x64xf32>
    %33 = tpu.matmul %30, %32, %cst_18 {dimension_numbers = #tpu.dot_dimension_numbers<[1], [0], [0], [1], [0, 0, 1, 1], [], []>} : vector<16x8xbf16>, vector<8x64xbf16>, vector<16x64xf32> -> vector<16x64xf32>
    %34 = vector.extract_strided_slice %13 {offsets = [0, 0, 8], sizes = [2, 8, 8], strides = [1, 1, 1]} : vector<2x8x64xf32> to vector<2x8x8xf32>
    %35 = vector.extract_strided_slice %14 {offsets = [0, 0, 8], sizes = [2, 24, 8], strides = [1, 1, 1]} : vector<2x24x128xf32> to vector<2x24x8xf32>
    %36 = vector.extract_strided_slice %14 {offsets = [0, 0, 72], sizes = [2, 24, 8], strides = [1, 1, 1]} : vector<2x24x128xf32> to vector<2x24x8xf32>
    "tpu.trace_start"() <{level = 10 : i32, message = "bqd,bkd->bqk"}> : () -> ()
    %cst_19 = arith.constant dense<0.000000e+00> : vector<2x8x24xf32>
    %37 = tpu.matmul %34, %35, %cst_19 {dimension_numbers = #tpu.dot_dimension_numbers<[2], [2], [1], [1], [0, 0, 0, 1, 1, 1], [0], [0]>} : vector<2x8x8xf32>, vector<2x24x8xf32>, vector<2x8x24xf32> -> vector<2x8x24xf32>
    "tpu.trace_stop"() : () -> ()
    %cst_20 = arith.constant dense<0xFF800000> : vector<2x8xf32>
    %38 = vector.multi_reduction <maximumf>, %37, %cst_20 [2] : vector<2x8x24xf32> to vector<2x8xf32>
    %39 = vector.shape_cast %38 : vector<2x8xf32> to vector<2x8x1xf32>
    %40 = vector.broadcast %39 : vector<2x8x1xf32> to vector<2x8x24xf32>
    %41 = arith.subf %37, %40 : vector<2x8x24xf32>
    %42 = math.exp %41 : vector<2x8x24xf32>
    %cst_21 = arith.constant dense<0.000000e+00> : vector<2x8xf32>
    %43 = vector.multi_reduction <add>, %42, %cst_21 [2] : vector<2x8x24xf32> to vector<2x8xf32>
    %44 = vector.shape_cast %43 : vector<2x8xf32> to vector<2x8x1xf32>
    %45 = vector.broadcast %44 : vector<2x8x1xf32> to vector<2x8x24xf32>
    %46 = arith.divf %42, %45 : vector<2x8x24xf32>
    "tpu.trace_start"() <{level = 10 : i32, message = "bqk,bkd->bqd"}> : () -> ()
    %cst_22 = arith.constant dense<0.000000e+00> : vector<2x8x8xf32>
    %47 = tpu.matmul %46, %36, %cst_22 {dimension_numbers = #tpu.dot_dimension_numbers<[2], [1], [1], [2], [0, 0, 0, 1, 1, 2], [0], [0]>} : vector<2x8x24xf32>, vector<2x24x8xf32>, vector<2x8x8xf32> -> vector<2x8x8xf32>
    "tpu.trace_stop"() : () -> ()
    %48 = vector.shape_cast %47 : vector<2x8x8xf32> to vector<16x8xf32>
    %49 = arith.truncf %48 : vector<16x8xf32> to vector<16x8xbf16>
    %c1 = arith.constant 1 : index
    %c0_23 = arith.constant 0 : index
    %c0_24 = arith.constant 0 : index
    %50 = vector.load %arg5[%c1, %c0_23, %c0_24] : memref<8x8x64xbf16, #tpu.memory_space<vmem>>, vector<1x8x64xbf16>
    %51 = vector.shape_cast %50 : vector<1x8x64xbf16> to vector<8x64xbf16>
    %cst_25 = arith.constant dense<0.000000e+00> : vector<16x64xf32>
    %52 = tpu.matmul %49, %51, %cst_25 {dimension_numbers = #tpu.dot_dimension_numbers<[1], [0], [0], [1], [0, 0, 1, 1], [], []>} : vector<16x8xbf16>, vector<8x64xbf16>, vector<16x64xf32> -> vector<16x64xf32>
    %53 = arith.addf %33, %52 : vector<16x64xf32>
    %54 = vector.extract_strided_slice %13 {offsets = [0, 0, 16], sizes = [2, 8, 8], strides = [1, 1, 1]} : vector<2x8x64xf32> to vector<2x8x8xf32>
    %55 = vector.extract_strided_slice %14 {offsets = [0, 0, 16], sizes = [2, 24, 8], strides = [1, 1, 1]} : vector<2x24x128xf32> to vector<2x24x8xf32>
    %56 = vector.extract_strided_slice %14 {offsets = [0, 0, 80], sizes = [2, 24, 8], strides = [1, 1, 1]} : vector<2x24x128xf32> to vector<2x24x8xf32>
    "tpu.trace_start"() <{level = 10 : i32, message = "bqd,bkd->bqk"}> : () -> ()
    %cst_26 = arith.constant dense<0.000000e+00> : vector<2x8x24xf32>
    %57 = tpu.matmul %54, %55, %cst_26 {dimension_numbers = #tpu.dot_dimension_numbers<[2], [2], [1], [1], [0, 0, 0, 1, 1, 1], [0], [0]>} : vector<2x8x8xf32>, vector<2x24x8xf32>, vector<2x8x24xf32> -> vector<2x8x24xf32>
    "tpu.trace_stop"() : () -> ()
    %cst_27 = arith.constant dense<0xFF800000> : vector<2x8xf32>
    %58 = vector.multi_reduction <maximumf>, %57, %cst_27 [2] : vector<2x8x24xf32> to vector<2x8xf32>
    %59 = vector.shape_cast %58 : vector<2x8xf32> to vector<2x8x1xf32>
    %60 = vector.broadcast %59 : vector<2x8x1xf32> to vector<2x8x24xf32>
    %61 = arith.subf %57, %60 : vector<2x8x24xf32>
    %62 = math.exp %61 : vector<2x8x24xf32>
    %cst_28 = arith.constant dense<0.000000e+00> : vector<2x8xf32>
    %63 = vector.multi_reduction <add>, %62, %cst_28 [2] : vector<2x8x24xf32> to vector<2x8xf32>
    %64 = vector.shape_cast %63 : vector<2x8xf32> to vector<2x8x1xf32>
    %65 = vector.broadcast %64 : vector<2x8x1xf32> to vector<2x8x24xf32>
    %66 = arith.divf %62, %65 : vector<2x8x24xf32>
    "tpu.trace_start"() <{level = 10 : i32, message = "bqk,bkd->bqd"}> : () -> ()
    %cst_29 = arith.constant dense<0.000000e+00> : vector<2x8x8xf32>
    %67 = tpu.matmul %66, %56, %cst_29 {dimension_numbers = #tpu.dot_dimension_numbers<[2], [1], [1], [2], [0, 0, 0, 1, 1, 2], [0], [0]>} : vector<2x8x24xf32>, vector<2x24x8xf32>, vector<2x8x8xf32> -> vector<2x8x8xf32>
    "tpu.trace_stop"() : () -> ()
    %68 = vector.shape_cast %67 : vector<2x8x8xf32> to vector<16x8xf32>
    %69 = arith.truncf %68 : vector<16x8xf32> to vector<16x8xbf16>
    %c2 = arith.constant 2 : index
    %c0_30 = arith.constant 0 : index
    %c0_31 = arith.constant 0 : index
    %70 = vector.load %arg5[%c2, %c0_30, %c0_31] : memref<8x8x64xbf16, #tpu.memory_space<vmem>>, vector<1x8x64xbf16>
    %71 = vector.shape_cast %70 : vector<1x8x64xbf16> to vector<8x64xbf16>
    %cst_32 = arith.constant dense<0.000000e+00> : vector<16x64xf32>
    %72 = tpu.matmul %69, %71, %cst_32 {dimension_numbers = #tpu.dot_dimension_numbers<[1], [0], [0], [1], [0, 0, 1, 1], [], []>} : vector<16x8xbf16>, vector<8x64xbf16>, vector<16x64xf32> -> vector<16x64xf32>
    %73 = arith.addf %53, %72 : vector<16x64xf32>
    %74 = vector.extract_strided_slice %13 {offsets = [0, 0, 24], sizes = [2, 8, 8], strides = [1, 1, 1]} : vector<2x8x64xf32> to vector<2x8x8xf32>
    %75 = vector.extract_strided_slice %14 {offsets = [0, 0, 24], sizes = [2, 24, 8], strides = [1, 1, 1]} : vector<2x24x128xf32> to vector<2x24x8xf32>
    %76 = vector.extract_strided_slice %14 {offsets = [0, 0, 88], sizes = [2, 24, 8], strides = [1, 1, 1]} : vector<2x24x128xf32> to vector<2x24x8xf32>
    "tpu.trace_start"() <{level = 10 : i32, message = "bqd,bkd->bqk"}> : () -> ()
    %cst_33 = arith.constant dense<0.000000e+00> : vector<2x8x24xf32>
    %77 = tpu.matmul %74, %75, %cst_33 {dimension_numbers = #tpu.dot_dimension_numbers<[2], [2], [1], [1], [0, 0, 0, 1, 1, 1], [0], [0]>} : vector<2x8x8xf32>, vector<2x24x8xf32>, vector<2x8x24xf32> -> vector<2x8x24xf32>
    "tpu.trace_stop"() : () -> ()
    %cst_34 = arith.constant dense<0xFF800000> : vector<2x8xf32>
    %78 = vector.multi_reduction <maximumf>, %77, %cst_34 [2] : vector<2x8x24xf32> to vector<2x8xf32>
    %79 = vector.shape_cast %78 : vector<2x8xf32> to vector<2x8x1xf32>
    %80 = vector.broadcast %79 : vector<2x8x1xf32> to vector<2x8x24xf32>
    %81 = arith.subf %77, %80 : vector<2x8x24xf32>
    %82 = math.exp %81 : vector<2x8x24xf32>
    %cst_35 = arith.constant dense<0.000000e+00> : vector<2x8xf32>
    %83 = vector.multi_reduction <add>, %82, %cst_35 [2] : vector<2x8x24xf32> to vector<2x8xf32>
    %84 = vector.shape_cast %83 : vector<2x8xf32> to vector<2x8x1xf32>
    %85 = vector.broadcast %84 : vector<2x8x1xf32> to vector<2x8x24xf32>
    %86 = arith.divf %82, %85 : vector<2x8x24xf32>
    "tpu.trace_start"() <{level = 10 : i32, message = "bqk,bkd->bqd"}> : () -> ()
    %cst_36 = arith.constant dense<0.000000e+00> : vector<2x8x8xf32>
    %87 = tpu.matmul %86, %76, %cst_36 {dimension_numbers = #tpu.dot_dimension_numbers<[2], [1], [1], [2], [0, 0, 0, 1, 1, 2], [0], [0]>} : vector<2x8x24xf32>, vector<2x24x8xf32>, vector<2x8x8xf32> -> vector<2x8x8xf32>
    "tpu.trace_stop"() : () -> ()
    %88 = vector.shape_cast %87 : vector<2x8x8xf32> to vector<16x8xf32>
    %89 = arith.truncf %88 : vector<16x8xf32> to vector<16x8xbf16>
    %c3 = arith.constant 3 : index
    %c0_37 = arith.constant 0 : index
    %c0_38 = arith.constant 0 : index
    %90 = vector.load %arg5[%c3, %c0_37, %c0_38] : memref<8x8x64xbf16, #tpu.memory_space<vmem>>, vector<1x8x64xbf16>
    %91 = vector.shape_cast %90 : vector<1x8x64xbf16> to vector<8x64xbf16>
    %cst_39 = arith.constant dense<0.000000e+00> : vector<16x64xf32>
    %92 = tpu.matmul %89, %91, %cst_39 {dimension_numbers = #tpu.dot_dimension_numbers<[1], [0], [0], [1], [0, 0, 1, 1], [], []>} : vector<16x8xbf16>, vector<8x64xbf16>, vector<16x64xf32> -> vector<16x64xf32>
    %93 = arith.addf %73, %92 : vector<16x64xf32>
    %94 = vector.extract_strided_slice %13 {offsets = [0, 0, 32], sizes = [2, 8, 8], strides = [1, 1, 1]} : vector<2x8x64xf32> to vector<2x8x8xf32>
    %95 = vector.extract_strided_slice %14 {offsets = [0, 0, 32], sizes = [2, 24, 8], strides = [1, 1, 1]} : vector<2x24x128xf32> to vector<2x24x8xf32>
    %96 = vector.extract_strided_slice %14 {offsets = [0, 0, 96], sizes = [2, 24, 8], strides = [1, 1, 1]} : vector<2x24x128xf32> to vector<2x24x8xf32>
    "tpu.trace_start"() <{level = 10 : i32, message = "bqd,bkd->bqk"}> : () -> ()
    %cst_40 = arith.constant dense<0.000000e+00> : vector<2x8x24xf32>
    %97 = tpu.matmul %94, %95, %cst_40 {dimension_numbers = #tpu.dot_dimension_numbers<[2], [2], [1], [1], [0, 0, 0, 1, 1, 1], [0], [0]>} : vector<2x8x8xf32>, vector<2x24x8xf32>, vector<2x8x24xf32> -> vector<2x8x24xf32>
    "tpu.trace_stop"() : () -> ()
    %cst_41 = arith.constant dense<0xFF800000> : vector<2x8xf32>
    %98 = vector.multi_reduction <maximumf>, %97, %cst_41 [2] : vector<2x8x24xf32> to vector<2x8xf32>
    %99 = vector.shape_cast %98 : vector<2x8xf32> to vector<2x8x1xf32>
    %100 = vector.broadcast %99 : vector<2x8x1xf32> to vector<2x8x24xf32>
    %101 = arith.subf %97, %100 : vector<2x8x24xf32>
    %102 = math.exp %101 : vector<2x8x24xf32>
    %cst_42 = arith.constant dense<0.000000e+00> : vector<2x8xf32>
    %103 = vector.multi_reduction <add>, %102, %cst_42 [2] : vector<2x8x24xf32> to vector<2x8xf32>
    %104 = vector.shape_cast %103 : vector<2x8xf32> to vector<2x8x1xf32>
    %105 = vector.broadcast %104 : vector<2x8x1xf32> to vector<2x8x24xf32>
    %106 = arith.divf %102, %105 : vector<2x8x24xf32>
    "tpu.trace_start"() <{level = 10 : i32, message = "bqk,bkd->bqd"}> : () -> ()
    %cst_43 = arith.constant dense<0.000000e+00> : vector<2x8x8xf32>
    %107 = tpu.matmul %106, %96, %cst_43 {dimension_numbers = #tpu.dot_dimension_numbers<[2], [1], [1], [2], [0, 0, 0, 1, 1, 2], [0], [0]>} : vector<2x8x24xf32>, vector<2x24x8xf32>, vector<2x8x8xf32> -> vector<2x8x8xf32>
    "tpu.trace_stop"() : () -> ()
    %108 = vector.shape_cast %107 : vector<2x8x8xf32> to vector<16x8xf32>
    %109 = arith.truncf %108 : vector<16x8xf32> to vector<16x8xbf16>
    %c4 = arith.constant 4 : index
    %c0_44 = arith.constant 0 : index
    %c0_45 = arith.constant 0 : index
    %110 = vector.load %arg5[%c4, %c0_44, %c0_45] : memref<8x8x64xbf16, #tpu.memory_space<vmem>>, vector<1x8x64xbf16>
    %111 = vector.shape_cast %110 : vector<1x8x64xbf16> to vector<8x64xbf16>
    %cst_46 = arith.constant dense<0.000000e+00> : vector<16x64xf32>
    %112 = tpu.matmul %109, %111, %cst_46 {dimension_numbers = #tpu.dot_dimension_numbers<[1], [0], [0], [1], [0, 0, 1, 1], [], []>} : vector<16x8xbf16>, vector<8x64xbf16>, vector<16x64xf32> -> vector<16x64xf32>
    %113 = arith.addf %93, %112 : vector<16x64xf32>
    %114 = vector.extract_strided_slice %13 {offsets = [0, 0, 40], sizes = [2, 8, 8], strides = [1, 1, 1]} : vector<2x8x64xf32> to vector<2x8x8xf32>
    %115 = vector.extract_strided_slice %14 {offsets = [0, 0, 40], sizes = [2, 24, 8], strides = [1, 1, 1]} : vector<2x24x128xf32> to vector<2x24x8xf32>
    %116 = vector.extract_strided_slice %14 {offsets = [0, 0, 104], sizes = [2, 24, 8], strides = [1, 1, 1]} : vector<2x24x128xf32> to vector<2x24x8xf32>
    "tpu.trace_start"() <{level = 10 : i32, message = "bqd,bkd->bqk"}> : () -> ()
    %cst_47 = arith.constant dense<0.000000e+00> : vector<2x8x24xf32>
    %117 = tpu.matmul %114, %115, %cst_47 {dimension_numbers = #tpu.dot_dimension_numbers<[2], [2], [1], [1], [0, 0, 0, 1, 1, 1], [0], [0]>} : vector<2x8x8xf32>, vector<2x24x8xf32>, vector<2x8x24xf32> -> vector<2x8x24xf32>
    "tpu.trace_stop"() : () -> ()
    %cst_48 = arith.constant dense<0xFF800000> : vector<2x8xf32>
    %118 = vector.multi_reduction <maximumf>, %117, %cst_48 [2] : vector<2x8x24xf32> to vector<2x8xf32>
    %119 = vector.shape_cast %118 : vector<2x8xf32> to vector<2x8x1xf32>
    %120 = vector.broadcast %119 : vector<2x8x1xf32> to vector<2x8x24xf32>
    %121 = arith.subf %117, %120 : vector<2x8x24xf32>
    %122 = math.exp %121 : vector<2x8x24xf32>
    %cst_49 = arith.constant dense<0.000000e+00> : vector<2x8xf32>
    %123 = vector.multi_reduction <add>, %122, %cst_49 [2] : vector<2x8x24xf32> to vector<2x8xf32>
    %124 = vector.shape_cast %123 : vector<2x8xf32> to vector<2x8x1xf32>
    %125 = vector.broadcast %124 : vector<2x8x1xf32> to vector<2x8x24xf32>
    %126 = arith.divf %122, %125 : vector<2x8x24xf32>
    "tpu.trace_start"() <{level = 10 : i32, message = "bqk,bkd->bqd"}> : () -> ()
    %cst_50 = arith.constant dense<0.000000e+00> : vector<2x8x8xf32>
    %127 = tpu.matmul %126, %116, %cst_50 {dimension_numbers = #tpu.dot_dimension_numbers<[2], [1], [1], [2], [0, 0, 0, 1, 1, 2], [0], [0]>} : vector<2x8x24xf32>, vector<2x24x8xf32>, vector<2x8x8xf32> -> vector<2x8x8xf32>
    "tpu.trace_stop"() : () -> ()
    %128 = vector.shape_cast %127 : vector<2x8x8xf32> to vector<16x8xf32>
    %129 = arith.truncf %128 : vector<16x8xf32> to vector<16x8xbf16>
    %c5 = arith.constant 5 : index
    %c0_51 = arith.constant 0 : index
    %c0_52 = arith.constant 0 : index
    %130 = vector.load %arg5[%c5, %c0_51, %c0_52] : memref<8x8x64xbf16, #tpu.memory_space<vmem>>, vector<1x8x64xbf16>
    %131 = vector.shape_cast %130 : vector<1x8x64xbf16> to vector<8x64xbf16>
    %cst_53 = arith.constant dense<0.000000e+00> : vector<16x64xf32>
    %132 = tpu.matmul %129, %131, %cst_53 {dimension_numbers = #tpu.dot_dimension_numbers<[1], [0], [0], [1], [0, 0, 1, 1], [], []>} : vector<16x8xbf16>, vector<8x64xbf16>, vector<16x64xf32> -> vector<16x64xf32>
    %133 = arith.addf %113, %132 : vector<16x64xf32>
    %134 = vector.extract_strided_slice %13 {offsets = [0, 0, 48], sizes = [2, 8, 8], strides = [1, 1, 1]} : vector<2x8x64xf32> to vector<2x8x8xf32>
    %135 = vector.extract_strided_slice %14 {offsets = [0, 0, 48], sizes = [2, 24, 8], strides = [1, 1, 1]} : vector<2x24x128xf32> to vector<2x24x8xf32>
    %136 = vector.extract_strided_slice %14 {offsets = [0, 0, 112], sizes = [2, 24, 8], strides = [1, 1, 1]} : vector<2x24x128xf32> to vector<2x24x8xf32>
    "tpu.trace_start"() <{level = 10 : i32, message = "bqd,bkd->bqk"}> : () -> ()
    %cst_54 = arith.constant dense<0.000000e+00> : vector<2x8x24xf32>
    %137 = tpu.matmul %134, %135, %cst_54 {dimension_numbers = #tpu.dot_dimension_numbers<[2], [2], [1], [1], [0, 0, 0, 1, 1, 1], [0], [0]>} : vector<2x8x8xf32>, vector<2x24x8xf32>, vector<2x8x24xf32> -> vector<2x8x24xf32>
    "tpu.trace_stop"() : () -> ()
    %cst_55 = arith.constant dense<0xFF800000> : vector<2x8xf32>
    %138 = vector.multi_reduction <maximumf>, %137, %cst_55 [2] : vector<2x8x24xf32> to vector<2x8xf32>
    %139 = vector.shape_cast %138 : vector<2x8xf32> to vector<2x8x1xf32>
    %140 = vector.broadcast %139 : vector<2x8x1xf32> to vector<2x8x24xf32>
    %141 = arith.subf %137, %140 : vector<2x8x24xf32>
    %142 = math.exp %141 : vector<2x8x24xf32>
    %cst_56 = arith.constant dense<0.000000e+00> : vector<2x8xf32>
    %143 = vector.multi_reduction <add>, %142, %cst_56 [2] : vector<2x8x24xf32> to vector<2x8xf32>
    %144 = vector.shape_cast %143 : vector<2x8xf32> to vector<2x8x1xf32>
    %145 = vector.broadcast %144 : vector<2x8x1xf32> to vector<2x8x24xf32>
    %146 = arith.divf %142, %145 : vector<2x8x24xf32>
    "tpu.trace_start"() <{level = 10 : i32, message = "bqk,bkd->bqd"}> : () -> ()
    %cst_57 = arith.constant dense<0.000000e+00> : vector<2x8x8xf32>
    %147 = tpu.matmul %146, %136, %cst_57 {dimension_numbers = #tpu.dot_dimension_numbers<[2], [1], [1], [2], [0, 0, 0, 1, 1, 2], [0], [0]>} : vector<2x8x24xf32>, vector<2x24x8xf32>, vector<2x8x8xf32> -> vector<2x8x8xf32>
    "tpu.trace_stop"() : () -> ()
    %148 = vector.shape_cast %147 : vector<2x8x8xf32> to vector<16x8xf32>
    %149 = arith.truncf %148 : vector<16x8xf32> to vector<16x8xbf16>
    %c6 = arith.constant 6 : index
    %c0_58 = arith.constant 0 : index
    %c0_59 = arith.constant 0 : index
    %150 = vector.load %arg5[%c6, %c0_58, %c0_59] : memref<8x8x64xbf16, #tpu.memory_space<vmem>>, vector<1x8x64xbf16>
    %151 = vector.shape_cast %150 : vector<1x8x64xbf16> to vector<8x64xbf16>
    %cst_60 = arith.constant dense<0.000000e+00> : vector<16x64xf32>
    %152 = tpu.matmul %149, %151, %cst_60 {dimension_numbers = #tpu.dot_dimension_numbers<[1], [0], [0], [1], [0, 0, 1, 1], [], []>} : vector<16x8xbf16>, vector<8x64xbf16>, vector<16x64xf32> -> vector<16x64xf32>
    %153 = arith.addf %133, %152 : vector<16x64xf32>
    %154 = vector.extract_strided_slice %13 {offsets = [0, 0, 56], sizes = [2, 8, 8], strides = [1, 1, 1]} : vector<2x8x64xf32> to vector<2x8x8xf32>
    %155 = vector.extract_strided_slice %14 {offsets = [0, 0, 56], sizes = [2, 24, 8], strides = [1, 1, 1]} : vector<2x24x128xf32> to vector<2x24x8xf32>
    %156 = vector.extract_strided_slice %14 {offsets = [0, 0, 120], sizes = [2, 24, 8], strides = [1, 1, 1]} : vector<2x24x128xf32> to vector<2x24x8xf32>
    "tpu.trace_start"() <{level = 10 : i32, message = "bqd,bkd->bqk"}> : () -> ()
    %cst_61 = arith.constant dense<0.000000e+00> : vector<2x8x24xf32>
    %157 = tpu.matmul %154, %155, %cst_61 {dimension_numbers = #tpu.dot_dimension_numbers<[2], [2], [1], [1], [0, 0, 0, 1, 1, 1], [0], [0]>} : vector<2x8x8xf32>, vector<2x24x8xf32>, vector<2x8x24xf32> -> vector<2x8x24xf32>
    "tpu.trace_stop"() : () -> ()
    %cst_62 = arith.constant dense<0xFF800000> : vector<2x8xf32>
    %158 = vector.multi_reduction <maximumf>, %157, %cst_62 [2] : vector<2x8x24xf32> to vector<2x8xf32>
    %159 = vector.shape_cast %158 : vector<2x8xf32> to vector<2x8x1xf32>
    %160 = vector.broadcast %159 : vector<2x8x1xf32> to vector<2x8x24xf32>
    %161 = arith.subf %157, %160 : vector<2x8x24xf32>
    %162 = math.exp %161 : vector<2x8x24xf32>
    %cst_63 = arith.constant dense<0.000000e+00> : vector<2x8xf32>
    %163 = vector.multi_reduction <add>, %162, %cst_63 [2] : vector<2x8x24xf32> to vector<2x8xf32>
    %164 = vector.shape_cast %163 : vector<2x8xf32> to vector<2x8x1xf32>
    %165 = vector.broadcast %164 : vector<2x8x1xf32> to vector<2x8x24xf32>
    %166 = arith.divf %162, %165 : vector<2x8x24xf32>
    "tpu.trace_start"() <{level = 10 : i32, message = "bqk,bkd->bqd"}> : () -> ()
    %cst_64 = arith.constant dense<0.000000e+00> : vector<2x8x8xf32>
    %167 = tpu.matmul %166, %156, %cst_64 {dimension_numbers = #tpu.dot_dimension_numbers<[2], [1], [1], [2], [0, 0, 0, 1, 1, 2], [0], [0]>} : vector<2x8x24xf32>, vector<2x24x8xf32>, vector<2x8x8xf32> -> vector<2x8x8xf32>
    "tpu.trace_stop"() : () -> ()
    %168 = vector.shape_cast %167 : vector<2x8x8xf32> to vector<16x8xf32>
    %169 = arith.truncf %168 : vector<16x8xf32> to vector<16x8xbf16>
    %c7 = arith.constant 7 : index
    %c0_65 = arith.constant 0 : index
    %c0_66 = arith.constant 0 : index
    %170 = vector.load %arg5[%c7, %c0_65, %c0_66] : memref<8x8x64xbf16, #tpu.memory_space<vmem>>, vector<1x8x64xbf16>
    %171 = vector.shape_cast %170 : vector<1x8x64xbf16> to vector<8x64xbf16>
    %cst_67 = arith.constant dense<0.000000e+00> : vector<16x64xf32>
    %172 = tpu.matmul %169, %171, %cst_67 {dimension_numbers = #tpu.dot_dimension_numbers<[1], [0], [0], [1], [0, 0, 1, 1], [], []>} : vector<16x8xbf16>, vector<8x64xbf16>, vector<16x64xf32> -> vector<16x64xf32>
    %173 = arith.addf %153, %172 : vector<16x64xf32>
    %c0_68 = arith.constant 0 : index
    %c0_69 = arith.constant 0 : index
    %174 = vector.load %arg6[%c0_68, %c0_69] : memref<1x64xf32, #tpu.memory_space<vmem>>, vector<1x64xf32>
    %175 = vector.broadcast %174 : vector<1x64xf32> to vector<16x64xf32>
    %176 = arith.addf %173, %175 : vector<16x64xf32>
    %177 = vector.shape_cast %176 : vector<16x64xf32> to vector<2x8x64xf32>
    %c0_70 = arith.constant 0 : index
    %c0_71 = arith.constant 0 : index
    %c0_72 = arith.constant 0 : index
    %178 = vector.load %arg7[%c0_70, %c0_71, %c0_72] : memref<2x8x64xf32, #tpu.memory_space<vmem>>, vector<2x8x64xf32>
    tpu.vector_store %arg7[%c0_70, %c0_71, %c0_72], %177 {strides = array<i32>} : memref<2x8x64xf32, #tpu.memory_space<vmem>>, vector<2x8x64xf32>,
    return
  }
  func.func @transform_0(%arg0: i32) -> (i32, i32, i32) {
    %c0_i32 = arith.constant 0 : i32
    %c0_i32_0 = arith.constant 0 : i32
    %c0_i32_1 = arith.constant 0 : i32
    return %arg0, %c0_i32, %c0_i32_0 : i32, i32, i32
  }
  func.func @transform_1(%arg0: i32) -> (i32, i32, i32) {
    %c0_i32 = arith.constant 0 : i32
    %c0_i32_0 = arith.constant 0 : i32
    %c0_i32_1 = arith.constant 0 : i32
    return %arg0, %c0_i32, %c0_i32_0 : i32, i32, i32
  }
  func.func @transform_2(%arg0: i32) -> (i32, i32) {
    %c0_i32 = arith.constant 0 : i32
    %c0_i32_0 = arith.constant 0 : i32
    %c0_i32_1 = arith.constant 0 : i32
    return %c0_i32, %c0_i32_0 : i32, i32
  }
  func.func @transform_3(%arg0: i32) -> (i32, i32) {
    %c0_i32 = arith.constant 0 : i32
    %c0_i32_0 = arith.constant 0 : i32
    %c0_i32_1 = arith.constant 0 : i32
    return %c0_i32, %c0_i32_0 : i32, i32
  }
  func.func @transform_4(%arg0: i32) -> (i32, i32, i32) {
    %c0_i32 = arith.constant 0 : i32
    %c0_i32_0 = arith.constant 0 : i32
    %c0_i32_1 = arith.constant 0 : i32
    %c0_i32_2 = arith.constant 0 : i32
    return %c0_i32, %c0_i32_0, %c0_i32_1 : i32, i32, i32
  }
  func.func @transform_5(%arg0: i32) -> (i32, i32) {
    %c0_i32 = arith.constant 0 : i32
    %c0_i32_0 = arith.constant 0 : i32
    %c0_i32_1 = arith.constant 0 : i32
    return %c0_i32, %c0_i32_0 : i32, i32
  }
  func.func @transform_6(%arg0: i32) -> (i32, i32, i32) {
    %c0_i32 = arith.constant 0 : i32
    %c0_i32_0 = arith.constant 0 : i32
    %c0_i32_1 = arith.constant 0 : i32
    return %arg0, %c0_i32, %c0_i32_0 : i32, i32, i32
  }
}

</mosaic_0001>

<bundles_post_ra>
// kernel: tpu_custom_call.1
= control target key start
LH: loop header
LB: loop body
LE: loop exit
PB: predicated region body
PF: predicated region fallthrough
CT: control target
= control target key end

     0   :  { %11 = vsyncpa [#allocation3], 0  ;;  %s2984_s0 = inlined_call_operand.hbm [shape: f32[2,8,64], index: 0, kind: input, shape index: {}]   ;;  %s2985_s1 = inlined_call_operand.hbm [shape: f32[2,16,64], index: 1, kind: input, shape index: {}]   ;;  %s2986_s2 = inlined_call_operand.hbm [shape: bf16[64,64], index: 2, kind: input, shape index: {}]   ;;  %s2987_s3 = inlined_call_operand.hbm [shape: bf16[64,128], index: 3, kind: input, shape index: {}]   ;;  %s2988_s4 = inlined_call_operand.hbm [shape: bf16[8,8,64], index: 4, kind: input, shape index: {}]   ;;  %s2989_s5 = inlined_call_operand.vmem [shape: f32[1,64], index: 5, kind: input, shape index: {}]   ;;  %s2990_s6 = inlined_call_operand.hbm [shape: f32[2,8,64], index: 6, kind: output, shape index: {}]  }
   0x1   :  { %12 = vsyncpa [#allocation6], 0 }
   0x2   :  { %13 = vsyncpa [#allocation9], 0 }
   0x3   :  { %14 = vsyncpa [#allocation4], 0  ;;  %s32_s23 = sshll.u32 %s2985_s1, 4  ;;  %s2403_s24 = smov [#allocation5]   ;;  %s33_s23 = int_to_ptr.hbm [resolvable:$true] %s32_s23 }
   0x4   :  { %s34_s25 = sshll.u32 %s2403_s24, 4  ;;  %s2404_s26 = smov 128   ;;  %s35_s25 = int_to_ptr.vmem [resolvable:$true] %s34_s25 }
   0x5   :  { %s2405_s27 = smov 8   ;;  %s58_s30 = sshll.u32 %s2987_s3, 4  ;;  %s59_s30 = int_to_ptr.hbm [resolvable:$true] %s58_s30 }
   0x6   :  { %40 = dma.hbm_to_vmem [thread:$0]  %s33_s23, 512, %s35_s25, [#allocation6], %s2404_s26, %s2404_s26, %s2405_s27  }
   0x7   :  { %s2406_s7 = smov [#allocation8]   ;;  %s19_s1 = sshll.u32 %s2984_s0, 4  ;;  %s20_s1 = int_to_ptr.hbm [resolvable:$true] %s19_s1 }
   0x8   :  { %s60_s8 = sshll.u32 %s2406_s7, 4  ;;  %s2407_s11 = smov 64   ;;  %s61_s8 = int_to_ptr.vmem [resolvable:$true] %s60_s8 }
   0x9   :  { %s2408_s12 = smov 4   ;;  %s45_s15 = sshll.u32 %s2986_s2, 4  ;;  %s46_s15 = int_to_ptr.hbm [resolvable:$true] %s45_s15 }
   0xa   :  { %66 = dma.hbm_to_vmem [thread:$0]  %s59_s30, 512, %s61_s8, [#allocation9], %s2407_s11, %s2407_s11, %s2408_s12  }
   0xb   :  { %s2409_s16 = smov [#allocation2]   ;;  %s2410_s0 = smov [#allocation7]  }
   0xc   :  { %s21_s3 = sshll.u32 %s2409_s16, 4  ;;  %s47_s17 = sshll.u32 %s2410_s0, 4  ;;  %s22_s3 = int_to_ptr.vmem [resolvable:$true] %s21_s3  ;;  %s48_s17 = int_to_ptr.vmem [resolvable:$true] %s47_s17 }
   0xd   :  { %27 = dma.hbm_to_vmem [thread:$0]  %s20_s1, 256, %s22_s3, [#allocation3], %s2404_s26, %s2404_s26, %s2405_s27  }
   0xe   :  { %s71_s20 = sshll.u32 %s2988_s4, 4  ;;  %s2411_s2 = smov [#allocation10]   ;;  %s72_s20 = int_to_ptr.hbm [resolvable:$true] %s71_s20 }
   0xf   :  { %53 = dma.hbm_to_vmem [thread:$0]  %s46_s15, 512, %s48_s17, [#allocation6], %s2407_s11, %s2407_s11, %s2408_s12  }
  0x10   :  { %s73_s21 = sshll.u32 %s2411_s2, 4  ;;  %s74_s21 = int_to_ptr.vmem [resolvable:$true] %s73_s21 }
  0x11   :  { %79 = dma.hbm_to_vmem [thread:$0]  %s72_s20, 512, %s74_s21, [#allocation9], %s2407_s11, %s2407_s11, %s2408_s12  }
  0x12   :  { %2395 = dma.done.wait [#allocation3], 256  }
  0x13   :  { %2396 = vsyncadd [#allocation3], 4294967040 }
  0x14   :  { %2397 = dma.done.wait [#allocation6], 1024  }
  0x15   :  { %2398 = vsyncadd [#allocation6], 4294966272 }
  0x16   :  { %2399 = dma.done.wait [#allocation9], 1024  }
  0x17   :  { %2400 = vsyncadd [#allocation9], 4294966272  ;;  %v2052_v0 = vld [vmem:[#allocation8 + $0x18] sm:$0xff]  ;;  %v2051_v1 = vld [vmem:[#allocation8 + $0x10] sm:$0xff]  ;;  %vm142_vm0 = vcmask 523264   ;;  %vm230_vm1 = vcmask 64512  }
  0x18   :  { %210 = vmatpush.bf16.msra.mxu1 %v2052_v0  ;;  %v2048_v2 = vld [vmem:[#allocation7 + $0x18] sm:$0xff]  ;;  %v2047_v3 = vld [vmem:[#allocation7 + $0x10] sm:$0xff]  ;;  %v2050_v4 = vld [vmem:[#allocation8 + $0x8] sm:$0xff]  ;;  %s2412_s4 = smov 120   ;;  %vm295_vm2 = vcmask 195584   ;;  %s2413_s22 = smov 56  }
  0x19   :  { %150 = vmatpush.bf16.msra.mxu0 %v2048_v2  ;;  %v2046_v5 = vld [vmem:[#allocation7 + $0x8] sm:$0xff]  ;;  %v2049_v6 = vld [vmem:[#allocation8] sm:$0xff]  ;;  %v103_v7 = vld [vmem:[#allocation2] sm:$0xff]  ;;  %s2414_s23 = smov 112   ;;  %s2415_s24 = smov 48   ;;  %vm600_vm7 = vcmask 1043456  }
  0x1a   :  { %v105_v8 = vld [vmem:[#allocation5] sm:$0xff]  ;;  %v104_v10 = vld [vmem:[#allocation2 + $0x8] sm:$0xff]  ;;  %v106_v13 = vld [vmem:[#allocation5 + $0x8] sm:$0xff]  ;;  %s2416_s25 = smov 104   ;;  %s2417_s28 = smov 40  }
  0x1b   :  { %v2045_v9 = vld [vmem:[#allocation7] sm:$0xff]  ;;  %v162_v11 = vpack.c.bf16 %v105_v8, %v103_v7  ;;  %v109_v12 = vpack.c.bf16 %v104_v10, %v103_v7  ;;  %v163_v14 = vpack.c.bf16 %v104_v10, %v106_v13  ;;  %v107_v15 = vld [vmem:[#allocation5 + $0x10] sm:$0xff]  ;;  %v108_v16 = vld [vmem:[#allocation5 + $0x18] sm:$0xff]  ;;  %s2418_s29 = smov 96   ;;  %s2419_s30 = smov 88  }
  0x1c   :  { %211 = vmatpush.bf16.msra.mxu1 %v2051_v1  ;;  %v164_v17 = vpack.c.bf16 %v108_v16, %v107_v15  ;;  %v596_v7 = vld [vmem:[#allocation10 + $0x4] sm:$0xf]  ;;  %s2420_s7 = smov 32   ;;  %s2421_s8 = smov 24  }
  0x1d   :  { %151 = vmatpush.bf16.msra.mxu0 %v2047_v3  ;;  %v602_v8 = vsel %vm600_vm7, %v596_v7, 0  ;;  %s2422_s9 = smov 80   ;;  %s2423_s10 = smov 72  }
  0x1e   :  { %s2424_s1 = smov 16   ;;  %s2425_s13 = smov [#allocation11]  }
  0x1f   :  { %s1904_s14 = sshll.u32 %s2425_s13, 4  ;;  %s1906_s3 = sshll.u32 %s2990_s6, 4  ;;  %s1905_s14 = int_to_ptr.vmem [resolvable:$true] %s1904_s14  ;;  %s1907_s3 = int_to_ptr.hbm [resolvable:$true] %s1906_s3 }
  0x20   :  { %212 = vmatpush.bf16.msra.mxu1 %v2050_v4 }
  0x21   :  { %152 = vmatpush.bf16.msra.mxu0 %v2046_v5 }
  0x24   :  { %213 = vmatpush.bf16.msra.mxu1 %v2049_v6 }
  0x25   :  { %153 = vmatpush.bf16.msra.mxu0 %v2045_v9 }
  0x27   :  { %1954 = vmatmul.msk.bf16.vlgmr.msra.gmra.mxu1 %vm142_vm0, %v162_v11 }
  0x28   :  { %1937 = vmatmul.msk.bf16.vlgmr.msra.gmra.mxu0 %vm142_vm0, %v109_v12 }
  0x37   :  { %1955 = vmatmul.msk.bf16.gmra.mxu1 %vm142_vm0, %v163_v14  ;;  %v409_v14 = vld [vmem:[#allocation10] sm:$0xf] }
  0x38   :  { %v622_v15 = vsel %vm600_vm7, %v409_v14, 0 }
  0x47   :  { %1956 = vmatmul.msk.bf16.gmra.mxu1 %vm142_vm0, %v164_v17 }
  0xa4   :  { %v2492_v18 = vpop.f32.mrf.mxu1 }
  0xa5   :  { %v155_v22 = vpop.f32.mrf.mxu0 }
  0xa6   :  { %v2508_v23 = vmul.f32 0.35355338, %v155_v22 }
  0xac   :  { %v2494_v19 = vpop.f32.mrf.mxu1 }
  0xad   :  { %v157_v27 = vpop.f32.mrf.mxu0 }
  0xae   :  { %v2532_v28 = vmul.f32 0.35355338, %v157_v27 }
  0xb4   :  { %v2496_v20 = vpop.f32.mrf.mxu1 }
  0xb5   :  { %1957 = vmatpush.xpose.msk.msra.mxu2 %vm230_vm1, %v2496_v20  ;;  %v2502_v21 = vpack.i.bf16 %v2494_v19, %v2496_v20 }
  0xb7   :  { %2077 = vrot.lane.b32.xlu1 %v2502_v21, %s2407_s11 }
  0xb9   :  { %1958 = vmatpush.xpose.msk.msra.mxu2 %vm230_vm1, %v2494_v19 }
  0xbc   :  { %v2510_v24 = vpop.f32.mrf.mxu1 }
  0xbd   :  { %1959 = vmatpush.xpose.msk.msra.mxu2 %vm230_vm1, %v2492_v18 }
  0xbf   :  { %416 = vrot.lane.b32.xlu1 %v2496_v20, %s2412_s4 }
  0xc0   :  { %1960 = vmatmul.msk.f32.vlgmr.msra.gmra.mxu2 %vm230_vm1, %v2508_v23 }
  0xc4   :  { %v2518_v25 = vpop.f32.mrf.mxu1 }
  0xc7   :  { %450 = vrot.lane.b32.xlu1 %v2518_v25, %s2412_s4 }
  0xcc   :  { %v2522_v26 = vpop.f32.mrf.mxu1 }
  0xcd   :  { %452 = vrot.lane.b32.xlu2 %v2522_v26, %s2412_s4  ;;  %1961 = vmatpush.xpose.msk.msra.mxu3 %vm230_vm1, %v2522_v26  ;;  %v2554_v41 = vpack.i.bf16 %v2518_v25, %v2522_v26  ;;  %v2567_v54 = vpack.i.bf16 %v2522_v26, %v2492_v18 }
  0xcf   :  { %448 = vrot.lane.b32.xlu1 %v2510_v24, %s2412_s4 }
  0xd1   :  { %1962 = vmatpush.xpose.msk.msra.mxu3 %vm230_vm1, %v2518_v25 }
  0xd5   :  { %344 = vrot.lane.b32.xlu2 %v2492_v18, %s2407_s11  ;;  %1963 = vmatpush.xpose.msk.msra.mxu3 %vm230_vm1, %v2510_v24 }
  0xd7   :  { %446 = vrot.lane.b32.xlu1 %v2532_v28, %s2412_s4 }
  0xd8   :  { %1964 = vmatmul.msk.f32.vlgmr.msra.gmra.mxu3 %vm230_vm1, %v2532_v28 }
  0xdd   :  { %412 = vrot.lane.b32.xlu2 %v2492_v18, %s2412_s4 }
  0xe5   :  { %410 = vrot.lane.b32.xlu2 %v2508_v23, %s2412_s4 }
 0x127   :  { %v453_v29 = vpop.permute.xlu2 %452 }
 0x129   :  { %v2078_v30 = vpop.permute.xlu1 %2077 }
 0x12a   :  { %v2079_v31 = vunpack.i.l.bf16 %v2078_v30  ;;  %v2080_v32 = vunpack.i.h.bf16 %v2078_v30 }
 0x12c   :  { %369 = vmatpush.msrb.mxu2 %v2079_v31 }
 0x12e   :  { %370 = vmatpush.msrb.mxu2 %v2080_v32 }
 0x12f   :  { %v345_v33 = vpop.permute.xlu2 %344 }
 0x130   :  { %371 = vmatpush.msrb.mxu2 %v345_v33 }
 0x131   :  { %v417_v34 = vpop.permute.xlu1 %416 }
 0x132   :  { %1971 = vmatpush.xpose.msk.msra.mxu2 %vm230_vm1, %v453_v29  ;;  %1967 = vmatpush.xpose.msk.msrb.mxu0 %vm230_vm1, %v417_v34 }
 0x137   :  { %v413_v45 = vpop.permute.xlu2 %412 }
 0x139   :  { %v451_v35 = vpop.permute.xlu1 %450 }
 0x13a   :  { %1972 = vmatpush.xpose.msk.msra.mxu2 %vm230_vm1, %v451_v35 }
 0x13f   :  { %v411_v48 = vpop.permute.xlu2 %410 }
 0x141   :  { %v449_v36 = vpop.permute.xlu1 %448 }
 0x142   :  { %1973 = vmatpush.xpose.msk.msra.mxu2 %vm230_vm1, %v449_v36 }
 0x143   :  { %v260_v37 = vpop.f32.mrf.mxu2 }
 0x144   :  { %v296_v38 = vsel %vm295_vm2, %v260_v37, -inf }
 0x145   :  { %297 = vmax.xlane.f32.xlu0 %v296_v38 }
 0x149   :  { %v447_v10 = vpop.permute.xlu1 %446 }
 0x15b   :  { %v292_v39 = vpop.f32.mrf.mxu3 }
 0x15c   :  { %v299_v40 = vsel %vm295_vm2, %v292_v39, -inf }
 0x15d   :  { %300 = vmax.xlane.f32.xlu2 %v299_v40 }
 0x175   :  { %2082 = vrot.lane.b32.xlu2 %v2554_v41, %s2407_s11 }
 0x1b8   :  { %v298_v42 = vpop.xlane.xlu0 %297 }
 0x1b9   :  { %v302_v43 = vsub.f32 %v260_v37, %v298_v42 }
 0x1bb   :  { %v304_v44 = vmul.f32 1.442695, %v302_v43 }
 0x1bd   :  { %2187 = vpow2.f32 %v304_v44 }
 0x1c3   :  { %v2188_v46 = vpop.eup %2187 }
 0x1c4   :  { %v308_v47 = vsel %vm295_vm2, %v2188_v46, 0.0 }
 0x1c5   :  { %309 = vadd.xlane.f32.xlu0 %v308_v47 }
 0x1d0   :  { %v301_v49 = vpop.xlane.xlu2 %300 }
 0x1d1   :  { %v303_v50 = vsub.f32 %v292_v39, %v301_v49 }
 0x1d3   :  { %v306_v51 = vmul.f32 1.442695, %v303_v50 }
 0x1d5   :  { %2189 = vpow2.f32 %v306_v51 }
 0x1d8   :  { %v2083_v55 = vpop.permute.xlu2 %2082 }
 0x1d9   :  { %414 = vrot.lane.b32.xlu0 %v2494_v19, %s2412_s4  ;;  %v2084_v56 = vunpack.i.l.bf16 %v2083_v55  ;;  %v2085_v57 = vunpack.i.h.bf16 %v2083_v55 }
 0x1db   :  { %v2561_v52 = vpop.eup %2189  ;;  %401 = vmatpush.msrb.mxu3 %v2084_v56 }
 0x1dc   :  { %v311_v53 = vsel %vm295_vm2, %v2561_v52, 0.0 }
 0x1dd   :  { %312 = vadd.xlane.f32.xlu2 %v311_v53  ;;  %402 = vmatpush.msrb.mxu3 %v2085_v57 }
 0x1f5   :  { %2092 = vrot.lane.b32.xlu2 %v2567_v54, %s2413_s22 }
 0x1fd   :  { %644 = vrot.lane.b32.xlu2 %v2496_v20, %s2414_s23 }
 0x205   :  { %638 = vrot.lane.b32.xlu2 %v2508_v23, %s2414_s23 }
 0x20d   :  { %680 = vrot.lane.b32.xlu2 %v2522_v26, %s2414_s23 }
 0x215   :  { %678 = vrot.lane.b32.xlu2 %v2518_v25, %s2414_s23 }
 0x21d   :  { %676 = vrot.lane.b32.xlu2 %v2510_v24, %s2414_s23 }
 0x225   :  { %2102 = vrot.lane.b32.xlu2 %v2502_v21, %s2415_s24 }
 0x22d   :  { %853 = vrot.lane.b32.xlu2 %v2496_v20, %s2416_s25 }
 0x235   :  { %758 = vrot.lane.b32.xlu2 %v2492_v18, %s2415_s24 }
 0x238   :  { %v310_v58 = vpop.xlane.xlu0 %309 }
 0x239   :  { %2191 = vrcp.f32 %v310_v58  ;;  %v325_v62 = vand.u32 2147483648, %v310_v58  ;;  %v323_v0 = vand.u32 2147483647, %v310_v58  ;;  %vm319_vm4 = vweird.f32 %v310_v58 }
 0x23b   :  { %v326_v2 = vor.u32 1.1754944e-38, %v325_v62  ;;  %vm324_vm6 = vcmp.eq.f32.partialorder %v323_v0, 8.507059e+37 }
 0x23d   :  { %851 = vrot.lane.b32.xlu2 %v2494_v19, %s2416_s25 }
 0x23f   :  { %v2192_v59 = vpop.eup %2191 }
 0x240   :  { %v315_v60 = vmul.f32 %v2192_v59, %v310_v58  ;;  %vm320_vm3 = vweird.f32 %v2192_v59 }
 0x241   :  { %vm321_vm5 = vmor %vm319_vm4, %vm320_vm3 }
 0x242   :  { %v316_v61 = vsub.f32 1.0, %v315_v60 }
 0x244   :  { %v317_v63 = vmul.f32 %v2192_v59, %v316_v61 }
 0x245   :  { %849 = vrot.lane.b32.xlu2 %v2492_v18, %s2416_s25 }
 0x246   :  { %v318_v1 = vadd.f32 %v2192_v59, %v317_v63 }
 0x248   :  { %v322_v3 = vsel %vm321_vm5, %v2192_v59, %v318_v1 }
 0x249   :  { %v327_v4 = vsel %vm324_vm6, %v326_v2, %v322_v3  ;;  %v2636_v2 = vpack.i.bf16 %v2510_v24, %v2518_v25 }
 0x24a   :  { %v328_v5 = vmul.f32 %v2188_v46, %v327_v4 }
 0x24b   :  { %v415_v6 = vpop.permute.xlu0 %414 }
 0x24c   :  { %1965 = vmatmul.msk.f32.vlgmr.msrb.gmra.mxu2 %vm295_vm2, %v328_v5  ;;  %1968 = vmatpush.xpose.msk.msrb.mxu0 %vm230_vm1, %v415_v6 }
 0x24d   :  { %883 = vrot.lane.b32.xlu2 %v2532_v28, %s2416_s25  ;;  %631 = vmatpush.bf16.msrb.mxu2 %v622_v15 }
 0x250   :  { %1969 = vmatpush.xpose.msk.msrb.mxu0 %vm230_vm1, %v413_v45  ;;  %v2597_v9 = vpop.xlane.xlu2 %312 }
 0x251   :  { %2193 = vrcp.f32 %v2597_v9  ;;  %v340_v51 = vand.u32 2147483648, %v2597_v9  ;;  %vm334_vm9 = vweird.f32 %v2597_v9  ;;  %v338_v56 = vand.u32 2147483647, %v2597_v9 }
 0x253   :  { %1970 = vmatmul.msk.f32.vlgmr.msrb.gmra.mxu0 %vm230_vm1, %v411_v48  ;;  %v341_v59 = vor.u32 1.1754944e-38, %v340_v51  ;;  %vm339_vm11 = vcmp.eq.f32.partialorder %v338_v56, 8.507059e+37 }
 0x254   :  { %611 = vmatpush.bf16.msra.mxu0 %v602_v8  ;;  %1974 = vmatmul.msk.f32.vlgmr.msra.gmra.mxu2 %vm230_vm1, %v447_v10 }
 0x257   :  { %v2194_v40 = vpop.eup %2193 }
 0x258   :  { %v2601_v11 = vpop.permute.xlu2 %2092  ;;  %v330_v42 = vmul.f32 %v2194_v40, %v2597_v9  ;;  %vm335_vm8 = vweird.f32 %v2194_v40 }
 0x259   :  { %vm336_vm10 = vmor %vm334_vm9, %vm335_vm8  ;;  %v2094_v5 = vunpack.i.l.bf16 %v2601_v11 }
 0x25a   :  { %v331_v44 = vsub.f32 1.0, %v330_v42 }
 0x25c   :  { %v332_v47 = vmul.f32 %v2194_v40, %v331_v44 }
 0x25e   :  { %v333_v50 = vadd.f32 %v2194_v40, %v332_v47 }
 0x260   :  { %v2603_v12 = vpop.permute.xlu2 %644  ;;  %v337_v58 = vsel %vm336_vm10, %v2194_v40, %v333_v50 }
 0x261   :  { %v342_v60 = vsel %vm339_vm11, %v341_v59, %v337_v58 }
 0x262   :  { %v343_v0 = vmul.f32 %v2561_v52, %v342_v60  ;;  %v2095_v52 = vunpack.i.h.bf16 %v2601_v11 }
 0x268   :  { %v2605_v13 = vpop.permute.xlu2 %638 }
 0x270   :  { %v681_v16 = vpop.permute.xlu2 %680 }
 0x271   :  { %1983 = vmatpush.xpose.msk.msrb.mxu0 %vm230_vm1, %v681_v16 }
 0x278   :  { %v679_v17 = vpop.permute.xlu2 %678 }
 0x279   :  { %1984 = vmatpush.xpose.msk.msrb.mxu0 %vm230_vm1, %v679_v17 }
 0x280   :  { %v677_v22 = vpop.permute.xlu2 %676 }
 0x281   :  { %1985 = vmatpush.xpose.msk.msrb.mxu0 %vm230_vm1, %v677_v22 }
 0x288   :  { %v2103_v27 = vpop.permute.xlu2 %2102 }
 0x289   :  { %v2104_v29 = vunpack.i.l.bf16 %v2103_v27  ;;  %v2105_v30 = vunpack.i.h.bf16 %v2103_v27 }
 0x28b   :  { %783 = vmatpush.msra.mxu2 %v2104_v29 }
 0x28d   :  { %784 = vmatpush.msra.mxu2 %v2105_v30 }
 0x290   :  { %v854_v31 = vpop.permute.xlu2 %853 }
 0x291   :  { %1990 = vmatpush.xpose.msk.msrb.mxu1 %vm230_vm1, %v854_v31 }
 0x298   :  { %v759_v32 = vpop.permute.xlu2 %758 }
 0x299   :  { %785 = vmatpush.msra.mxu2 %v759_v32 }
 0x2a0   :  { %v852_v33 = vpop.permute.xlu2 %851 }
 0x2a1   :  { %1991 = vmatpush.xpose.msk.msrb.mxu1 %vm230_vm1, %v852_v33 }
 0x2a8   :  { %v850_v34 = vpop.permute.xlu2 %849 }
 0x2a9   :  { %1992 = vmatpush.xpose.msk.msrb.mxu1 %vm230_vm1, %v850_v34 }
 0x2cf   :  { %v2614_v35 = vpop.f32.mrf.mxu2 }
 0x2d0   :  { %v443_v36 = vpop.f32.mrf.mxu0 }
 0x2d1   :  { %v482_v37 = vsel %vm295_vm2, %v443_v36, -inf }
 0x2d2   :  { %483 = vmax.xlane.f32.xlu0 %v482_v37 }
 0x2d7   :  { %v479_v38 = vpop.f32.mrf.mxu2 }
 0x2d8   :  { %v485_v39 = vsel %vm295_vm2, %v479_v38, -inf }
 0x2d9   :  { %486 = vmax.xlane.f32.xlu1 %v485_v39 }
 0x2e6   :  { %376 = vrot.lane.b32.xlu0 %v2510_v24, %s2407_s11 }
 0x2f2   :  { %2087 = vrot.lane.b32.xlu1 %v2502_v21, %s2413_s22 }
 0x345   :  { %v484_v43 = vpop.xlane.xlu0 %483 }
 0x346   :  { %v488_v45 = vsub.f32 %v443_v36, %v484_v43 }
 0x348   :  { %v490_v46 = vmul.f32 1.442695, %v488_v45 }
 0x34a   :  { %2195 = vpow2.f32 %v490_v46 }
 0x34c   :  { %v487_v48 = vpop.xlane.xlu1 %486 }
 0x34d   :  { %v489_v49 = vsub.f32 %v479_v38, %v487_v48 }
 0x34f   :  { %v492_v53 = vmul.f32 1.442695, %v489_v49 }
 0x350   :  { %v2196_v55 = vpop.eup %2195 }
 0x351   :  { %2197 = vpow2.f32 %v492_v53  ;;  %v494_v57 = vsel %vm295_vm2, %v2196_v55, 0.0 }
 0x352   :  { %495 = vadd.xlane.f32.xlu0 %v494_v57 }
 0x357   :  { %v2628_v61 = vpop.eup %2197 }
 0x358   :  { %v377_v62 = vpop.permute.xlu0 %376  ;;  %v497_v63 = vsel %vm295_vm2, %v2628_v61, 0.0 }
 0x359   :  { %498 = vadd.xlane.f32.xlu1 %v497_v63  ;;  %403 = vmatpush.msrb.mxu3 %v377_v62 }
 0x35a   :  { %1966 = vmatmul.msk.f32.vlgmr.msrb.gmra.mxu3 %vm295_vm2, %v343_v0 }
 0x364   :  { %v2088_v1 = vpop.permute.xlu1 %2087 }
 0x365   :  { %v2089_v3 = vunpack.i.l.bf16 %v2088_v1  ;;  %v2090_v4 = vunpack.i.h.bf16 %v2088_v1 }
 0x366   :  { %2097 = vrot.lane.b32.xlu0 %v2636_v2, %s2413_s22 }
 0x367   :  { %555 = vmatpush.msra.mxu3 %v2089_v3 }
 0x369   :  { %556 = vmatpush.msra.mxu3 %v2090_v4 }
 0x36b   :  { %557 = vmatpush.msra.mxu3 %v2094_v5 }
 0x36d   :  { %587 = vmatpush.msrb.mxu3 %v2095_v52 }
 0x36e   :  { %642 = vrot.lane.b32.xlu0 %v2494_v19, %s2414_s23 }
 0x372   :  { %640 = vrot.lane.b32.xlu1 %v2492_v18, %s2414_s23 }
 0x37a   :  { %674 = vrot.lane.b32.xlu1 %v2532_v28, %s2414_s23 }
 0x3c5   :  { %v496_v6 = vpop.xlane.xlu0 %495 }
 0x3c6   :  { %2199 = vrcp.f32 %v496_v6  ;;  %v511_v14 = vand.u32 2147483648, %v496_v6  ;;  %v509_v15 = vand.u32 2147483647, %v496_v6  ;;  %vm505_vm13 = vweird.f32 %v496_v6 }
 0x3c8   :  { %v512_v22 = vor.u32 1.1754944e-38, %v511_v14  ;;  %vm510_vm15 = vcmp.eq.f32.partialorder %v509_v15, 8.507059e+37 }
 0x3cc   :  { %v2200_v7 = vpop.eup %2199  ;;  %v499_v8 = vpop.xlane.xlu1 %498 }
 0x3cd   :  { %v501_v9 = vmul.f32 %v2200_v7, %v496_v6  ;;  %2201 = vrcp.f32 %v499_v8  ;;  %vm506_vm12 = vweird.f32 %v2200_v7  ;;  %v526_v32 = vand.u32 2147483648, %v499_v8 }
 0x3ce   :  { %vm507_vm14 = vmor %vm505_vm13, %vm506_vm12  ;;  %v524_v36 = vand.u32 2147483647, %v499_v8  ;;  %vm520_vm4 = vweird.f32 %v499_v8 }
 0x3cf   :  { %v502_v10 = vsub.f32 1.0, %v501_v9  ;;  %v527_v40 = vor.u32 1.1754944e-38, %v526_v32 }
 0x3d0   :  { %vm525_vm6 = vcmp.eq.f32.partialorder %v524_v36, 8.507059e+37 }
 0x3d1   :  { %v503_v11 = vmul.f32 %v2200_v7, %v502_v10 }
 0x3d3   :  { %v2202_v16 = vpop.eup %2201  ;;  %v504_v17 = vadd.f32 %v2200_v7, %v503_v11 }
 0x3d4   :  { %v516_v27 = vmul.f32 %v2202_v16, %v499_v8  ;;  %vm521_vm3 = vweird.f32 %v2202_v16 }
 0x3d5   :  { %v508_v29 = vsel %vm507_vm14, %v2200_v7, %v504_v17  ;;  %vm522_vm5 = vmor %vm520_vm4, %vm521_vm3 }
 0x3d6   :  { %v513_v30 = vsel %vm510_vm15, %v512_v22, %v508_v29  ;;  %v517_v31 = vsub.f32 1.0, %v516_v27  ;;  %v884_v22 = vpop.permute.xlu2 %883 }
 0x3d7   :  { %v514_v33 = vmul.f32 %v2196_v55, %v513_v30 }
 0x3d8   :  { %v518_v34 = vmul.f32 %v2202_v16, %v517_v31  ;;  %v2098_v37 = vpop.permute.xlu0 %2097 }
 0x3d9   :  { %v2099_v38 = vunpack.i.l.bf16 %v2098_v37  ;;  %1975 = vmatmul.msk.f32.vlgmr.msra.gmra.mxu3 %vm295_vm2, %v514_v33  ;;  %v2100_v42 = vunpack.i.h.bf16 %v2098_v37 }
 0x3da   :  { %v519_v39 = vadd.f32 %v2202_v16, %v518_v34 }
 0x3db   :  { %588 = vmatpush.msrb.mxu3 %v2099_v38 }
 0x3dc   :  { %v523_v43 = vsel %vm522_vm5, %v2202_v16, %v519_v39 }
 0x3dd   :  { %v528_v44 = vsel %vm525_vm6, %v527_v40, %v523_v43  ;;  %v405_v45 = vpop.f32.mrf.mxu3  ;;  %589 = vmatpush.msrb.mxu3 %v2100_v42 }
 0x3de   :  { %v408_v46 = vpack.c.bf16 %v405_v45, %v2614_v35  ;;  %v529_v47 = vmul.f32 %v2628_v61, %v528_v44 }
 0x3df   :  { %1979 = vmatpush.xpose.msk.msra.mxu3 %vm230_vm1, %v2603_v12 }
 0x3e0   :  { %v643_v48 = vpop.permute.xlu0 %642  ;;  %1978 = vmatmul.msk.bf16.vlgmr.msrb.gmra.mxu2 %vm230_vm1, %v408_v46 }
 0x3e1   :  { %1976 = vmatmul.msk.f32.vlgmr.msrb.gmra.mxu3 %vm295_vm2, %v529_v47 }
 0x3e3   :  { %1980 = vmatpush.xpose.msk.msra.mxu3 %vm230_vm1, %v643_v48 }
 0x3e4   :  { %v641_v49 = vpop.permute.xlu1 %640 }
 0x3e7   :  { %1981 = vmatpush.xpose.msk.msra.mxu3 %vm230_vm1, %v641_v49 }
 0x3ea   :  { %1982 = vmatmul.msk.f32.vlgmr.msra.gmra.mxu3 %vm230_vm1, %v2605_v13 }
 0x3ec   :  { %v675_v55 = vpop.permute.xlu1 %674 }
 0x45c   :  { %v559_v50 = vpop.f32.mrf.mxu3 }
 0x463   :  { %v2687_v36 = vpop.f32.mrf.mxu2 }
 0x464   :  { %v591_v35 = vpop.f32.mrf.mxu3 }
 0x465   :  { %v594_v51 = vpack.c.bf16 %v591_v35, %v559_v50 }
 0x467   :  { %1977 = vmatmul.msk.bf16.vlgmr.msra.gmra.mxu0 %vm230_vm1, %v594_v51 }
 0x46b   :  { %v2689_v37 = vpop.f32.mrf.mxu2 }
 0x46d   :  { %v671_v12 = vpop.f32.mrf.mxu3 }
 0x46e   :  { %v710_v53 = vsel %vm295_vm2, %v671_v12, -inf }
 0x46f   :  { %711 = vmax.xlane.f32.xlu0 %v710_v53  ;;  %v824_v53 = vld [vmem:[#allocation10 + $0x8] sm:$0xf] }
 0x477   :  { %1986 = vmatmul.msk.f32.vlgmr.msrb.gmra.mxu0 %vm230_vm1, %v675_v55  ;;  %v829_v55 = vsel %vm600_vm7, %v824_v53, 0 }
 0x478   :  { %838 = vmatpush.bf16.msra.mxu0 %v829_v55 }
 0x483   :  { %889 = vrot.lane.b32.xlu0 %v2522_v26, %s2416_s25 }
 0x48b   :  { %887 = vrot.lane.b32.xlu0 %v2518_v25, %s2416_s25 }
 0x493   :  { %847 = vrot.lane.b32.xlu0 %v2508_v23, %s2416_s25 }
 0x4e2   :  { %v712_v13 = vpop.xlane.xlu0 %711 }
 0x4e3   :  { %v716_v56 = vsub.f32 %v671_v12, %v712_v13 }
 0x4e4   :  { %v2674_v63 = vpop.f32.mrf.mxu0 }
 0x4e5   :  { %v718_v57 = vmul.f32 1.442695, %v716_v56 }
 0x4e7   :  { %2203 = vpow2.f32 %v718_v57 }
 0x4ec   :  { %v2676_v0 = vpop.f32.mrf.mxu0 }
 0x4ed   :  { %v2204_v58 = vpop.eup %2203 }
 0x4ee   :  { %v722_v59 = vsel %vm295_vm2, %v2204_v58, 0.0 }
 0x4ef   :  { %723 = vadd.xlane.f32.xlu1 %v722_v59 }
 0x4f4   :  { %v707_v1 = vpop.f32.mrf.mxu0 }
 0x4f5   :  { %v890_v60 = vpop.permute.xlu0 %889  ;;  %v713_v3 = vsel %vm295_vm2, %v707_v1, -inf }
 0x4f6   :  { %1994 = vmatpush.xpose.msk.msrb.mxu2 %vm230_vm1, %v890_v60 }
 0x4fd   :  { %v888_v61 = vpop.permute.xlu0 %887 }
 0x4fe   :  { %1995 = vmatpush.xpose.msk.msrb.mxu2 %vm230_vm1, %v888_v61 }
 0x505   :  { %v848_v62 = vpop.permute.xlu0 %847 }
 0x506   :  { %1993 = vmatmul.msk.f32.vlgmr.msrb.gmra.mxu1 %vm230_vm1, %v848_v62 }
 0x508   :  { %885 = vrot.lane.b32.xlu1 %v2510_v24, %s2416_s25 }
 0x532   :  { %714 = vmax.xlane.f32.xlu1 %v713_v3 }
 0x562   :  { %v724_v4 = vpop.xlane.xlu1 %723 }
 0x563   :  { %2205 = vrcp.f32 %v724_v4  ;;  %v739_v7 = vand.u32 2147483648, %v724_v4  ;;  %v737_v9 = vand.u32 2147483647, %v724_v4  ;;  %vm733_vm9 = vweird.f32 %v724_v4 }
 0x565   :  { %v740_v14 = vor.u32 1.1754944e-38, %v739_v7  ;;  %vm738_vm11 = vcmp.eq.f32.partialorder %v737_v9, 8.507059e+37 }
 0x569   :  { %v2206_v5 = vpop.eup %2205 }
 0x56a   :  { %v729_v52 = vmul.f32 %v2206_v5, %v724_v4  ;;  %vm734_vm8 = vweird.f32 %v2206_v5 }
 0x56b   :  { %vm735_vm10 = vmor %vm733_vm9, %vm734_vm8 }
 0x56c   :  { %v730_v6 = vsub.f32 1.0, %v729_v52 }
 0x56e   :  { %v731_v8 = vmul.f32 %v2206_v5, %v730_v6 }
 0x570   :  { %v732_v10 = vadd.f32 %v2206_v5, %v731_v8 }
 0x572   :  { %v736_v11 = vsel %vm735_vm10, %v2206_v5, %v732_v10 }
 0x573   :  { %v741_v15 = vsel %vm738_vm11, %v740_v14, %v736_v11 }
 0x574   :  { %v742_v16 = vmul.f32 %v2204_v58, %v741_v15 }
 0x576   :  { %1987 = vmatmul.msk.f32.vlgmr.msra.gmra.mxu2 %vm295_vm2, %v742_v16 }
 0x57a   :  { %v886_v17 = vpop.permute.xlu1 %885 }
 0x57b   :  { %1996 = vmatpush.xpose.msk.msrb.mxu2 %vm230_vm1, %v886_v17 }
 0x57e   :  { %1997 = vmatmul.msk.f32.vlgmr.msrb.gmra.mxu2 %vm230_vm1, %v884_v22 }
 0x583   :  { %v880_v27 = vpop.f32.mrf.mxu1 }
 0x584   :  { %v919_v29 = vsel %vm295_vm2, %v880_v27, -inf }
 0x585   :  { %920 = vmax.xlane.f32.xlu0 %v919_v29 }
 0x5a5   :  { %v715_v30 = vpop.xlane.xlu1 %714 }
 0x5a6   :  { %v717_v31 = vsub.f32 %v707_v1, %v715_v30 }
 0x5a8   :  { %v720_v32 = vmul.f32 1.442695, %v717_v31 }
 0x5aa   :  { %2207 = vpow2.f32 %v720_v32 }
 0x5b0   :  { %v2683_v33 = vpop.eup %2207 }
 0x5b1   :  { %v725_v34 = vsel %vm295_vm2, %v2683_v33, 0.0 }
 0x5b2   :  { %726 = vadd.xlane.f32.xlu1 %v725_v34 }
 0x5f8   :  { %v921_v38 = vpop.xlane.xlu0 %920 }
 0x5f9   :  { %v925_v39 = vsub.f32 %v880_v27, %v921_v38  ;;  %v2691_v40 = vpop.f32.mrf.mxu2 }
 0x5fb   :  { %v927_v42 = vmul.f32 1.442695, %v925_v39 }
 0x5fd   :  { %2209 = vpow2.f32 %v927_v42 }
 0x601   :  { %v916_v43 = vpop.f32.mrf.mxu2 }
 0x602   :  { %v922_v44 = vsel %vm295_vm2, %v916_v43, -inf }
 0x603   :  { %v2694_v45 = vpop.eup %2209  ;;  %923 = vmax.xlane.f32.xlu2 %v922_v44 }
 0x604   :  { %v931_v46 = vsel %vm295_vm2, %v2694_v45, 0.0 }
 0x605   :  { %932 = vadd.xlane.f32.xlu0 %v931_v46 }
 0x619   :  { %790 = vrot.lane.b32.xlu0 %v2510_v24, %s2415_s24 }
 0x61b   :  { %2107 = vrot.lane.b32.xlu2 %v2554_v41, %s2415_s24 }
 0x621   :  { %2122 = vrot.lane.b32.xlu0 %v2636_v2, %s2417_s28 }
 0x623   :  { %2117 = vrot.lane.b32.xlu2 %v2567_v54, %s2417_s28 }
 0x625   :  { %v727_v47 = vpop.xlane.xlu1 %726 }
 0x626   :  { %2211 = vrcp.f32 %v727_v47  ;;  %v754_v61 = vand.u32 2147483648, %v727_v47  ;;  %vm748_vm13 = vweird.f32 %v727_v47  ;;  %v752_v1 = vand.u32 2147483647, %v727_v47 }
 0x628   :  { %v755_v5 = vor.u32 1.1754944e-38, %v754_v61  ;;  %vm753_vm15 = vcmp.eq.f32.partialorder %v752_v1, 8.507059e+37  ;;  %v1033_v1 = vld [vmem:[#allocation10 + $0xc] sm:$0xf] }
 0x629   :  { %1062 = vrot.lane.b32.xlu0 %v2496_v20, %s2418_s29 }
 0x62b   :  { %1098 = vrot.lane.b32.xlu2 %v2522_v26, %s2418_s29 }
 0x62c   :  { %v2212_v48 = vpop.eup %2211 }
 0x62d   :  { %v744_v49 = vmul.f32 %v2212_v48, %v727_v47  ;;  %vm749_vm12 = vweird.f32 %v2212_v48 }
 0x62e   :  { %vm750_vm14 = vmor %vm748_vm13, %vm749_vm12 }
 0x62f   :  { %v745_v51 = vsub.f32 1.0, %v744_v49 }
 0x631   :  { %1094 = vrot.lane.b32.xlu0 %v2510_v24, %s2418_s29  ;;  %v746_v13 = vmul.f32 %v2212_v48, %v745_v51 }
 0x633   :  { %1060 = vrot.lane.b32.xlu2 %v2494_v19, %s2418_s29  ;;  %v747_v59 = vadd.f32 %v2212_v48, %v746_v13 }
 0x635   :  { %v751_v4 = vsel %vm750_vm14, %v2212_v48, %v747_v59 }
 0x636   :  { %v756_v7 = vsel %vm753_vm15, %v755_v5, %v751_v4  ;;  %v1038_v5 = vsel %vm600_vm7, %v1033_v1, 0 }
 0x637   :  { %v757_v9 = vmul.f32 %v2683_v33, %v756_v7 }
 0x639   :  { %1058 = vrot.lane.b32.xlu0 %v2492_v18, %s2418_s29 }
 0x63b   :  { %1092 = vrot.lane.b32.xlu2 %v2532_v28, %s2418_s29 }
 0x641   :  { %1056 = vrot.lane.b32.xlu0 %v2508_v23, %s2418_s29 }
 0x643   :  { %1271 = vrot.lane.b32.xlu2 %v2496_v20, %s2419_s30 }
 0x649   :  { %1301 = vrot.lane.b32.xlu0 %v2532_v28, %s2419_s30 }
 0x64b   :  { %1269 = vrot.lane.b32.xlu2 %v2494_v19, %s2419_s30 }
 0x653   :  { %1265 = vrot.lane.b32.xlu2 %v2508_v23, %s2419_s30 }
 0x676   :  { %v924_v50 = vpop.xlane.xlu2 %923 }
 0x677   :  { %v926_v35 = vsub.f32 %v916_v43, %v924_v50 }
 0x678   :  { %v2733_v3 = vpop.xlane.xlu0 %932 }
 0x679   :  { %v929_v12 = vmul.f32 1.442695, %v926_v35  ;;  %vm942_vm9 = vweird.f32 %v2733_v3  ;;  %v946_v53 = vand.u32 2147483647, %v2733_v3 }
 0x67b   :  { %2213 = vpow2.f32 %v929_v12  ;;  %v948_v12 = vand.u32 2147483648, %v2733_v3  ;;  %vm947_vm11 = vcmp.eq.f32.partialorder %v946_v53, 8.507059e+37 }
 0x67c   :  { %2215 = vrcp.f32 %v2733_v3 }
 0x67e   :  { %v2108_v56 = vpop.permute.xlu2 %2107 }
 0x67f   :  { %v2109_v57 = vunpack.i.l.bf16 %v2108_v56  ;;  %v2110_v60 = vunpack.i.h.bf16 %v2108_v56  ;;  %v949_v56 = vor.u32 1.1754944e-38, %v948_v12 }
 0x681   :  { %v2729_v58 = vpop.eup %2213  ;;  %815 = vmatpush.msrb.mxu3 %v2109_v57 }
 0x682   :  { %v934_v62 = vsel %vm295_vm2, %v2729_v58, 0.0  ;;  %v2216_v30 = vpop.eup %2215 }
 0x683   :  { %935 = vadd.xlane.f32.xlu1 %v934_v62  ;;  %816 = vmatpush.msrb.mxu3 %v2110_v60  ;;  %v938_v32 = vmul.f32 %v2216_v30, %v2733_v3  ;;  %vm943_vm8 = vweird.f32 %v2216_v30 }
 0x684   :  { %vm944_vm10 = vmor %vm942_vm9, %vm943_vm8 }
 0x685   :  { %v939_v39 = vsub.f32 1.0, %v938_v32 }
 0x686   :  { %v2735_v52 = vpop.permute.xlu2 %2117 }
 0x687   :  { %v2120_v6 = vunpack.i.h.bf16 %v2735_v52  ;;  %v940_v47 = vmul.f32 %v2216_v30, %v939_v39  ;;  %v2119_v4 = vunpack.i.l.bf16 %v2735_v52 }
 0x689   :  { %1024 = vmatpush.msra.mxu1 %v2120_v6  ;;  %v941_v51 = vadd.f32 %v2216_v30, %v940_v47 }
 0x68b   :  { %v791_v8 = vpop.permute.xlu0 %790  ;;  %v945_v55 = vsel %vm944_vm10, %v2216_v30, %v941_v51 }
 0x68c   :  { %817 = vmatpush.msrb.mxu3 %v791_v8  ;;  %v950_v60 = vsel %vm947_vm11, %v949_v56, %v945_v55 }
 0x68d   :  { %1988 = vmatmul.msk.f32.vlgmr.msrb.gmra.mxu3 %vm295_vm2, %v757_v9  ;;  %v951_v3 = vmul.f32 %v2694_v45, %v950_v60 }
 0x68e   :  { %v1099_v10 = vpop.permute.xlu2 %1098 }
 0x68f   :  { %2005 = vmatpush.xpose.msk.msra.mxu2 %vm230_vm1, %v1099_v10 }
 0x693   :  { %v2123_v14 = vpop.permute.xlu0 %2122 }
 0x694   :  { %v2124_v11 = vunpack.i.l.bf16 %v2123_v14  ;;  %v2125_v15 = vunpack.i.h.bf16 %v2123_v14  ;;  %v634_v14 = vadd.f32 %v2687_v36, %v2674_v63 }
 0x696   :  { %1025 = vmatpush.msra.mxu1 %v2124_v11  ;;  %v1061_v17 = vpop.permute.xlu2 %1060 }
 0x698   :  { %1026 = vmatpush.msra.mxu1 %v2125_v15 }
 0x69b   :  { %v1063_v16 = vpop.permute.xlu0 %1062 }
 0x69c   :  { %2001 = vmatpush.xpose.msk.msrb.mxu0 %vm230_vm1, %v1063_v16  ;;  %2112 = vrot.lane.b32.xlu1 %v2502_v21, %s2417_s28  ;;  %v636_v16 = vadd.f32 %v2689_v37, %v2676_v0 }
 0x69e   :  { %v1093_v49 = vpop.permute.xlu2 %1092 }
 0x6a0   :  { %2002 = vmatpush.xpose.msk.msrb.mxu0 %vm230_vm1, %v1061_v17 }
 0x6a3   :  { %v1095_v22 = vpop.permute.xlu0 %1094 }
 0x6a4   :  { %1096 = vrot.lane.b32.xlu1 %v2518_v25, %s2418_s29 }
 0x6a6   :  { %v1272_v61 = vpop.permute.xlu2 %1271 }
 0x6ab   :  { %v1059_v27 = vpop.permute.xlu0 %1058 }
 0x6ac   :  { %1307 = vrot.lane.b32.xlu1 %v2522_v26, %s2419_s30  ;;  %2003 = vmatpush.xpose.msk.msrb.mxu0 %vm230_vm1, %v1059_v27 }
 0x6b3   :  { %v1057_v45 = vpop.permute.xlu0 %1056 }
 0x6b4   :  { %1305 = vrot.lane.b32.xlu1 %v2518_v25, %s2419_s30 }
 0x6bb   :  { %v1302_v9 = vpop.permute.xlu0 %1301 }
 0x6bc   :  { %1303 = vrot.lane.b32.xlu1 %v2510_v24, %s2419_s30 }
 0x6c4   :  { %1267 = vrot.lane.b32.xlu1 %v2492_v18, %s2419_s30 }
 0x6f6   :  { %v936_v29 = vpop.xlane.xlu1 %935 }
 0x6f7   :  { %2217 = vrcp.f32 %v936_v29  ;;  %v963_v38 = vand.u32 2147483648, %v936_v29  ;;  %v961_v43 = vand.u32 2147483647, %v936_v29  ;;  %vm957_vm4 = vweird.f32 %v936_v29 }
 0x6f9   :  { %v964_v46 = vor.u32 1.1754944e-38, %v963_v38  ;;  %vm962_vm6 = vcmp.eq.f32.partialorder %v961_v43, 8.507059e+37 }
 0x6fd   :  { %v2218_v31 = vpop.eup %2217 }
 0x6fe   :  { %v953_v33 = vmul.f32 %v2218_v31, %v936_v29  ;;  %vm958_vm3 = vweird.f32 %v2218_v31 }
 0x6ff   :  { %vm959_vm5 = vmor %vm957_vm4, %vm958_vm3 }
 0x700   :  { %v954_v34 = vsub.f32 1.0, %v953_v33 }
 0x702   :  { %v955_v42 = vmul.f32 %v2218_v31, %v954_v34 }
 0x704   :  { %v956_v44 = vadd.f32 %v2218_v31, %v955_v42 }
 0x706   :  { %v960_v48 = vsel %vm959_vm5, %v2218_v31, %v956_v44 }
 0x707   :  { %v965_v50 = vsel %vm962_vm6, %v964_v46, %v960_v48 }
 0x708   :  { %v966_v35 = vmul.f32 %v2729_v58, %v965_v50 }
 0x70a   :  { %1999 = vmatmul.msk.f32.vlgmr.msra.gmra.mxu1 %vm295_vm2, %v966_v35 }
 0x70e   :  { %v2113_v13 = vpop.permute.xlu1 %2112 }
 0x70f   :  { %v2114_v57 = vunpack.i.l.bf16 %v2113_v13  ;;  %v2115_v58 = vunpack.i.h.bf16 %v2113_v13 }
 0x710   :  { %v819_v59 = vpop.f32.mrf.mxu3 }
 0x711   :  { %v822_v62 = vpack.c.bf16 %v819_v59, %v2691_v40  ;;  %992 = vmatpush.msra.mxu3 %v2114_v57  ;;  %v1270_v40 = vpop.permute.xlu2 %1269 }
 0x713   :  { %1989 = vmatmul.msk.bf16.vlgmr.msra.gmra.mxu0 %vm230_vm1, %v822_v62  ;;  %993 = vmatpush.msra.mxu3 %v2115_v58 }
 0x715   :  { %994 = vmatpush.msra.mxu3 %v2119_v4 }
 0x716   :  { %v1097_v6 = vpop.permute.xlu1 %1096  ;;  %1998 = vmatmul.msk.f32.vlgmr.msra.gmra.mxu3 %vm295_vm2, %v951_v3 }
 0x717   :  { %1047 = vmatpush.bf16.msrb.mxu3 %v1038_v5  ;;  %2006 = vmatpush.xpose.msk.msra.mxu2 %vm230_vm1, %v1097_v6 }
 0x719   :  { %v1266_v63 = vpop.permute.xlu2 %1265 }
 0x71b   :  { %2012 = vmatpush.xpose.msk.msra.mxu3 %vm230_vm1, %v1272_v61  ;;  %2007 = vmatpush.xpose.msk.msra.mxu2 %vm230_vm1, %v1095_v22  ;;  %v2810_v61 = vpack.i.bf16 %v2496_v20, %v2510_v24 }
 0x71e   :  { %v1308_v52 = vpop.permute.xlu1 %1307  ;;  %2008 = vmatmul.msk.f32.vlgmr.msra.gmra.mxu2 %vm230_vm1, %v1093_v49 }
 0x71f   :  { %2013 = vmatpush.xpose.msk.msra.mxu3 %vm230_vm1, %v1270_v40  ;;  %2016 = vmatpush.xpose.msk.msrb.mxu2 %vm230_vm1, %v1308_v52 }
 0x723   :  { %2004 = vmatmul.msk.f32.vlgmr.msrb.gmra.mxu0 %vm230_vm1, %v1057_v45 }
 0x726   :  { %v1306_v7 = vpop.permute.xlu1 %1305 }
 0x727   :  { %2017 = vmatpush.xpose.msk.msrb.mxu2 %vm230_vm1, %v1306_v7 }
 0x72e   :  { %v1304_v8 = vpop.permute.xlu1 %1303 }
 0x72f   :  { %2018 = vmatpush.xpose.msk.msrb.mxu2 %vm230_vm1, %v1304_v8 }
 0x732   :  { %2019 = vmatmul.msk.f32.vlgmr.msrb.gmra.mxu2 %vm230_vm1, %v1302_v9 }
 0x736   :  { %v1268_v10 = vpop.permute.xlu1 %1267 }
 0x737   :  { %2014 = vmatpush.xpose.msk.msra.mxu3 %vm230_vm1, %v1268_v10 }
 0x787   :  { %v1028_v22 = vpop.f32.mrf.mxu1 }
 0x790   :  { %v840_v11 = vpop.f32.mrf.mxu0 }
 0x791   :  { %v845_v15 = vadd.f32 %v840_v11, %v634_v14 }
 0x798   :  { %v842_v17 = vpop.f32.mrf.mxu0 }
 0x799   :  { %v846_v27 = vadd.f32 %v842_v17, %v636_v16  ;;  %v996_v29 = vpop.f32.mrf.mxu3 }
 0x79a   :  { %v1031_v30 = vpack.c.bf16 %v1028_v22, %v996_v29 }
 0x79c   :  { %2000 = vmatmul.msk.bf16.vlgmr.msrb.gmra.mxu3 %vm230_vm1, %v1031_v30 }
 0x7a0   :  { %v1089_v31 = vpop.f32.mrf.mxu0 }
 0x7a1   :  { %v1125_v32 = vpop.f32.mrf.mxu2  ;;  %v1128_v33 = vsel %vm295_vm2, %v1089_v31, -inf }
 0x7a2   :  { %1129 = vmax.xlane.f32.xlu0 %v1128_v33  ;;  %v1131_v34 = vsel %vm295_vm2, %v1125_v32, -inf }
 0x7a3   :  { %1132 = vmax.xlane.f32.xlu1 %v1131_v34  ;;  %v1451_v34 = vld [vmem:[#allocation10 + $0x14] sm:$0xf] }
 0x7ac   :  { %2015 = vmatmul.msk.f32.vlgmr.msra.gmra.mxu3 %vm230_vm1, %v1266_v63 }
 0x7b5   :  { %v1334_v36 = vpop.f32.mrf.mxu2 }
 0x7b6   :  { %v1340_v0 = vsel %vm295_vm2, %v1334_v36, -inf }
 0x7b7   :  { %1341 = vmax.xlane.f32.xlu2 %v1340_v0 }
 0x815   :  { %v1130_v37 = vpop.xlane.xlu0 %1129 }
 0x816   :  { %v1134_v38 = vsub.f32 %v1089_v31, %v1130_v37  ;;  %v1133_v39 = vpop.xlane.xlu1 %1132 }
 0x817   :  { %v1135_v42 = vsub.f32 %v1125_v32, %v1133_v39 }
 0x818   :  { %v1136_v43 = vmul.f32 1.442695, %v1134_v38 }
 0x819   :  { %v1138_v44 = vmul.f32 1.442695, %v1135_v42 }
 0x81a   :  { %2219 = vpow2.f32 %v1136_v43 }
 0x81b   :  { %2221 = vpow2.f32 %v1138_v44 }
 0x81f   :  { %v1049_v46 = vpop.f32.mrf.mxu3 }
 0x820   :  { %v2789_v47 = vpop.eup %2219  ;;  %v2791_v48 = vadd.f32 %v1049_v46, %v845_v15 }
 0x821   :  { %v2793_v49 = vpop.eup %2221  ;;  %v1140_v50 = vsel %vm295_vm2, %v2789_v47, 0.0 }
 0x822   :  { %1141 = vadd.xlane.f32.xlu1 %v1140_v50  ;;  %v1143_v35 = vsel %vm295_vm2, %v2793_v49, 0.0 }
 0x823   :  { %1144 = vadd.xlane.f32.xlu2 %v1143_v35 }
 0x827   :  { %v1051_v51 = vpop.f32.mrf.mxu3 }
 0x828   :  { %v2799_v12 = vadd.f32 %v1051_v51, %v846_v27 }
 0x82a   :  { %v1342_v53 = vpop.xlane.xlu2 %1341 }
 0x82b   :  { %v1344_v55 = vsub.f32 %v1334_v36, %v1342_v53  ;;  %v1456_v36 = vsel %vm600_vm7, %v1451_v34, 0 }
 0x82c   :  { %1465 = vmatpush.bf16.msra.mxu2 %v1456_v36 }
 0x82d   :  { %v1347_v13 = vmul.f32 1.442695, %v1344_v55  ;;  %v1242_v55 = vld [vmem:[#allocation10 + $0x10] sm:$0xf] }
 0x82f   :  { %2223 = vpow2.f32 %v1347_v13  ;;  %v1298_v56 = vpop.f32.mrf.mxu3 }
 0x830   :  { %v1337_v57 = vsel %vm295_vm2, %v1298_v56, -inf }
 0x831   :  { %1338 = vmax.xlane.f32.xlu0 %v1337_v57 }
 0x835   :  { %v2802_v59 = vpop.eup %2223 }
 0x836   :  { %v1352_v60 = vsel %vm295_vm2, %v2802_v59, 0.0 }
 0x839   :  { %1353 = vadd.xlane.f32.xlu0 %v1352_v60 }
 0x83b   :  { %2137 = vrot.lane.b32.xlu2 %v2636_v2, %s2420_s7  ;;  %2127 = vrot.lane.b32.xlu1 %v2502_v21, %s2420_s7 }
 0x843   :  { %2147 = vrot.lane.b32.xlu1 %v2810_v61, %s2421_s8 }
 0x84b   :  { %1516 = vrot.lane.b32.xlu1 %v2522_v26, %s2422_s9 }
 0x84d   :  { %2132 = vrot.lane.b32.xlu0 %v2567_v54, %s2420_s7 }
 0x853   :  { %1476 = vrot.lane.b32.xlu1 %v2492_v18, %s2422_s9 }
 0x855   :  { %2142 = vrot.lane.b32.xlu0 %v2554_v41, %s2421_s8 }
 0x85b   :  { %1725 = vrot.lane.b32.xlu1 %v2522_v26, %s2423_s10 }
 0x85d   :  { %1480 = vrot.lane.b32.xlu0 %v2496_v20, %s2422_s9 }
 0x863   :  { %1687 = vrot.lane.b32.xlu1 %v2494_v19, %s2423_s10 }
 0x865   :  { %1514 = vrot.lane.b32.xlu0 %v2518_v25, %s2422_s9 }
 0x86b   :  { %1721 = vrot.lane.b32.xlu1 %v2510_v24, %s2423_s10 }
 0x86d   :  { %1689 = vrot.lane.b32.xlu0 %v2496_v20, %s2423_s10 }
 0x875   :  { %1510 = vrot.lane.b32.xlu0 %v2532_v28, %s2422_s9 }
 0x87d   :  { %1685 = vrot.lane.b32.xlu0 %v2492_v18, %s2423_s10 }
 0x885   :  { %1719 = vrot.lane.b32.xlu0 %v2532_v28, %s2423_s10 }
 0x895   :  { %v1142_v26 = vpop.xlane.xlu1 %1141 }
 0x896   :  { %2225 = vrcp.f32 %v1142_v26  ;;  %v2839_v1 = vpop.xlane.xlu2 %1144  ;;  %v1157_v27 = vand.u32 2147483648, %v1142_v26  ;;  %vm1151_vm13 = vweird.f32 %v1142_v26  ;;  %v1155_v29 = vand.u32 2147483647, %v1142_v26 }
 0x897   :  { %v1172_v39 = vand.u32 2147483648, %v2839_v1  ;;  %vm1166_vm4 = vweird.f32 %v2839_v1  ;;  %v1170_v44 = vand.u32 2147483647, %v2839_v1 }
 0x898   :  { %v1158_v33 = vor.u32 1.1754944e-38, %v1157_v27  ;;  %vm1156_vm15 = vcmp.eq.f32.partialorder %v1155_v29, 8.507059e+37 }
 0x899   :  { %v1173_v13 = vor.u32 1.1754944e-38, %v1172_v39  ;;  %vm1171_vm8 = vcmp.eq.f32.partialorder %v1170_v44, 8.507059e+37 }
 0x89c   :  { %v2226_v3 = vpop.eup %2225 }
 0x89d   :  { %v1147_v20 = vmul.f32 %v2226_v3, %v1142_v26  ;;  %vm1152_vm12 = vweird.f32 %v2226_v3 }
 0x89e   :  { %vm1153_vm14 = vmor %vm1151_vm13, %vm1152_vm12  ;;  %v2138_v46 = vpop.permute.xlu2 %2137 }
 0x89f   :  { %v1148_v28 = vsub.f32 1.0, %v1147_v20 }
 0x8a1   :  { %v1149_v9 = vmul.f32 %v2226_v3, %v1148_v28 }
 0x8a3   :  { %v1150_v16 = vadd.f32 %v2226_v3, %v1149_v9 }
 0x8a4   :  { %v1339_v58 = vpop.xlane.xlu0 %1338 }
 0x8a5   :  { %v1343_v62 = vsub.f32 %v1298_v56, %v1339_v58  ;;  %v1154_v30 = vsel %vm1153_vm14, %v2226_v3, %v1150_v16  ;;  %v2139_v56 = vunpack.i.l.bf16 %v2138_v46  ;;  %v2140_v58 = vunpack.i.h.bf16 %v2138_v46 }
 0x8a6   :  { %v1159_v63 = vsel %vm1156_vm15, %v1158_v33, %v1154_v30  ;;  %v2879_v3 = vpack.i.bf16 %v2492_v18, %v2494_v19 }
 0x8a7   :  { %v1345_v4 = vmul.f32 1.442695, %v1343_v62  ;;  %v1160_v50 = vmul.f32 %v2789_v47, %v1159_v63  ;;  %v1247_v62 = vsel %vm600_vm7, %v1242_v55, 0 }
 0x8a9   :  { %2227 = vpow2.f32 %v1345_v4 }
 0x8aa   :  { %2229 = vrcp.f32 %v2839_v1 }
 0x8ac   :  { %v2842_v5 = vpop.xlane.xlu0 %1353 }
 0x8ad   :  { %v2128_v6 = vpop.permute.xlu1 %2127  ;;  %2231 = vrcp.f32 %v2842_v5  ;;  %v1381_v57 = vand.u32 2147483648, %v2842_v5  ;;  %vm1375_vm9 = vweird.f32 %v2842_v5  ;;  %v1379_v47 = vand.u32 2147483647, %v2842_v5 }
 0x8ae   :  { %v2129_v40 = vunpack.i.l.bf16 %v2128_v6  ;;  %v2130_v7 = vunpack.i.h.bf16 %v2128_v6 }
 0x8af   :  { %v2845_v52 = vpop.eup %2227  ;;  %v1382_v20 = vor.u32 1.1754944e-38, %v1381_v57  ;;  %vm1380_vm11 = vcmp.eq.f32.partialorder %v1379_v47, 8.507059e+37 }
 0x8b0   :  { %v2230_v45 = vpop.eup %2229  ;;  %1201 = vmatpush.msrb.mxu1 %v2129_v40  ;;  %v1349_v8 = vsel %vm295_vm2, %v2845_v52, 0.0 }
 0x8b1   :  { %1350 = vadd.xlane.f32.xlu2 %v1349_v8  ;;  %v1162_v10 = vmul.f32 %v2230_v45, %v2839_v1  ;;  %vm1167_vm3 = vweird.f32 %v2230_v45 }
 0x8b2   :  { %1202 = vmatpush.msrb.mxu1 %v2130_v7  ;;  %vm2863_vm5 = vmor %vm1166_vm4, %vm1167_vm3 }
 0x8b3   :  { %v2850_v14 = vpop.eup %2231  ;;  %v1163_v17 = vsub.f32 1.0, %v1162_v10 }
 0x8b4   :  { %v1371_v22 = vmul.f32 %v2850_v14, %v2842_v5  ;;  %vm1376_vm6 = vweird.f32 %v2850_v14 }
 0x8b5   :  { %v2852_v11 = vpop.permute.xlu1 %2147  ;;  %v1164_v31 = vmul.f32 %v2230_v45, %v1163_v17  ;;  %vm1377_vm10 = vmor %vm1375_vm9, %vm1376_vm6 }
 0x8b6   :  { %v2150_v15 = vunpack.i.h.bf16 %v2852_v11  ;;  %v1372_v32 = vsub.f32 1.0, %v1371_v22 }
 0x8b7   :  { %v1165_v0 = vadd.f32 %v2230_v45, %v1164_v31 }
 0x8b8   :  { %1410 = vmatpush.msra.mxu0 %v2150_v15  ;;  %v1373_v37 = vmul.f32 %v2850_v14, %v1372_v32 }
 0x8b9   :  { %v1169_v51 = vsel %vm2863_vm5, %v2230_v45, %v1165_v0  ;;  %v2149_v45 = vunpack.i.l.bf16 %v2852_v11 }
 0x8ba   :  { %v1374_v53 = vadd.f32 %v2850_v14, %v1373_v37  ;;  %v1174_v26 = vsel %vm1171_vm8, %v1173_v13, %v1169_v51 }
 0x8bb   :  { %v1175_v5 = vmul.f32 %v2793_v49, %v1174_v26 }
 0x8bc   :  { %v1378_v1 = vsel %vm1377_vm10, %v2850_v14, %v1374_v53 }
 0x8bd   :  { %v1517_v60 = vpop.permute.xlu1 %1516  ;;  %v1383_v40 = vsel %vm1380_vm11, %v1382_v20, %v1378_v1 }
 0x8be   :  { %v1384_v18 = vmul.f32 %v2802_v59, %v1383_v40 }
 0x8bf   :  { %v2133_v38 = vpop.permute.xlu0 %2132 }
 0x8c0   :  { %v2135_v42 = vunpack.i.h.bf16 %v2133_v38  ;;  %v2134_v43 = vunpack.i.l.bf16 %v2133_v38 }
 0x8c2   :  { %1203 = vmatpush.msrb.mxu1 %v2134_v43 }
 0x8c3   :  { %2009 = vmatmul.msk.f32.vlgmr.msrb.gmra.mxu1 %vm295_vm2, %v1160_v50 }
 0x8c4   :  { %1233 = vmatpush.msra.mxu1 %v2135_v42 }
 0x8c5   :  { %v1477_v7 = vpop.permute.xlu1 %1476 }
 0x8c6   :  { %1234 = vmatpush.msra.mxu1 %v2139_v56 }
 0x8c7   :  { %v2143_v4 = vpop.permute.xlu0 %2142 }
 0x8c8   :  { %v2144_v6 = vunpack.i.l.bf16 %v2143_v4  ;;  %1235 = vmatpush.msra.mxu1 %v2140_v58  ;;  %v2145_v28 = vunpack.i.h.bf16 %v2143_v4 }
 0x8c9   :  { %2152 = vrot.lane.b32.xlu2 %v2879_v3, %s2421_s8 }
 0x8ca   :  { %1256 = vmatpush.bf16.msrb.mxu1 %v1247_v62  ;;  %1442 = vmatpush.msrb.mxu3 %v2144_v6 }
 0x8cb   :  { %2010 = vmatmul.msk.f32.vlgmr.msra.gmra.mxu1 %vm295_vm2, %v1175_v5 }
 0x8cc   :  { %1443 = vmatpush.msrb.mxu3 %v2145_v28 }
 0x8cd   :  { %v1726_v9 = vpop.permute.xlu1 %1725 }
 0x8ce   :  { %1444 = vmatpush.msrb.mxu3 %v2149_v45 }
 0x8cf   :  { %v1481_v8 = vpop.permute.xlu0 %1480  ;;  %2021 = vmatmul.msk.f32.vlgmr.msrb.gmra.mxu3 %vm295_vm2, %v1384_v18 }
 0x8d0   :  { %2023 = vmatpush.xpose.msk.msra.mxu1 %vm230_vm1, %v1481_v8 }
 0x8d1   :  { %1478 = vrot.lane.b32.xlu2 %v2494_v19, %s2422_s9 }
 0x8d5   :  { %v1688_v59 = vpop.permute.xlu1 %1687 }
 0x8d7   :  { %v1515_v49 = vpop.permute.xlu0 %1514 }
 0x8d9   :  { %1512 = vrot.lane.b32.xlu2 %v2510_v24, %s2422_s9 }
 0x8df   :  { %v1690_v10 = vpop.permute.xlu0 %1689 }
 0x8e0   :  { %2034 = vmatpush.xpose.msk.msrb.mxu2 %vm230_vm1, %v1690_v10 }
 0x8e1   :  { %1474 = vrot.lane.b32.xlu2 %v2508_v23, %s2422_s9 }
 0x8e4   :  { %2035 = vmatpush.xpose.msk.msrb.mxu2 %vm230_vm1, %v1688_v59 }
 0x8e7   :  { %v1511_v14 = vpop.permute.xlu0 %1510 }
 0x8e9   :  { %1723 = vrot.lane.b32.xlu2 %v2518_v25, %s2423_s10 }
 0x8ef   :  { %v1686_v11 = vpop.permute.xlu0 %1685 }
 0x8f0   :  { %2036 = vmatpush.xpose.msk.msrb.mxu2 %vm230_vm1, %v1686_v11 }
 0x8f1   :  { %1683 = vrot.lane.b32.xlu2 %v2508_v23, %s2423_s10 }
 0x8f7   :  { %v1720_v43 = vpop.permute.xlu0 %1719 }
 0x924   :  { %v1351_v19 = vpop.xlane.xlu2 %1350 }
 0x925   :  { %2233 = vrcp.f32 %v1351_v19  ;;  %v1366_v27 = vand.u32 2147483648, %v1351_v19  ;;  %v1364_v31 = vand.u32 2147483647, %v1351_v19  ;;  %vm1360_vm13 = vweird.f32 %v1351_v19 }
 0x927   :  { %v1367_v23 = vor.u32 1.1754944e-38, %v1366_v27  ;;  %vm1365_vm15 = vcmp.eq.f32.partialorder %v1364_v31, 8.507059e+37 }
 0x92b   :  { %v2234_v24 = vpop.eup %2233 }
 0x92c   :  { %v1356_v15 = vmul.f32 %v2234_v24, %v1351_v19  ;;  %v2153_v16 = vpop.permute.xlu2 %2152  ;;  %vm1361_vm12 = vweird.f32 %v2234_v24 }
 0x92d   :  { %v2154_v17 = vunpack.i.l.bf16 %v2153_v16  ;;  %v2155_v29 = vunpack.i.h.bf16 %v2153_v16  ;;  %vm1362_vm14 = vmor %vm1360_vm13, %vm1361_vm12 }
 0x92e   :  { %v1357_v22 = vsub.f32 1.0, %v1356_v15 }
 0x92f   :  { %1411 = vmatpush.msra.mxu0 %v2154_v17 }
 0x930   :  { %v1358_v30 = vmul.f32 %v2234_v24, %v1357_v22 }
 0x931   :  { %1412 = vmatpush.msra.mxu0 %v2155_v29 }
 0x932   :  { %v1359_v25 = vadd.f32 %v2234_v24, %v1358_v30 }
 0x933   :  { %2027 = vmatpush.xpose.msk.msrb.mxu0 %vm230_vm1, %v1517_v60 }
 0x934   :  { %v1363_v32 = vsel %vm1362_vm14, %v2234_v24, %v1359_v25  ;;  %v1479_v33 = vpop.permute.xlu2 %1478 }
 0x935   :  { %v1368_v34 = vsel %vm1365_vm15, %v1367_v23, %v1363_v32  ;;  %2024 = vmatpush.xpose.msk.msra.mxu1 %vm230_vm1, %v1479_v33 }
 0x936   :  { %v1369_v63 = vmul.f32 %v2845_v52, %v1368_v34  ;;  %v1722_v52 = vpop.permute.xlu1 %1721 }
 0x937   :  { %2028 = vmatpush.xpose.msk.msrb.mxu0 %vm230_vm1, %v1515_v49 }
 0x938   :  { %2020 = vmatmul.msk.f32.vlgmr.msra.gmra.mxu0 %vm295_vm2, %v1369_v63 }
 0x939   :  { %2025 = vmatpush.xpose.msk.msra.mxu1 %vm230_vm1, %v1477_v7 }
 0x93c   :  { %v1513_v36 = vpop.permute.xlu2 %1512 }
 0x93d   :  { %2029 = vmatpush.xpose.msk.msrb.mxu0 %vm230_vm1, %v1513_v36 }
 0x940   :  { %v1205_v0 = vpop.f32.mrf.mxu1  ;;  %2030 = vmatmul.msk.f32.vlgmr.msrb.gmra.mxu0 %vm230_vm1, %v1511_v14 }
 0x941   :  { %2038 = vmatpush.xpose.msk.msra.mxu0 %vm230_vm1, %v1726_v9 }
 0x944   :  { %v1475_v37 = vpop.permute.xlu2 %1474 }
 0x948   :  { %v1237_v38 = vpop.f32.mrf.mxu1 }
 0x949   :  { %v1240_v39 = vpack.c.bf16 %v1237_v38, %v1205_v0 }
 0x94b   :  { %2011 = vmatmul.msk.bf16.vlgmr.msrb.gmra.mxu1 %vm230_vm1, %v1240_v39 }
 0x94c   :  { %v1724_v42 = vpop.permute.xlu2 %1723 }
 0x94d   :  { %2039 = vmatpush.xpose.msk.msra.mxu0 %vm230_vm1, %v1724_v42 }
 0x951   :  { %2040 = vmatpush.xpose.msk.msra.mxu0 %vm230_vm1, %v1722_v52 }
 0x952   :  { %v1446_v44 = vpop.f32.mrf.mxu3 }
 0x954   :  { %2041 = vmatmul.msk.f32.vlgmr.msra.gmra.mxu0 %vm230_vm1, %v1720_v43  ;;  %v1684_v53 = vpop.permute.xlu2 %1683 }
 0x95b   :  { %2026 = vmatmul.msk.f32.vlgmr.msra.gmra.mxu1 %vm230_vm1, %v1475_v37 }
 0x9b5   :  { %v1414_v46 = vpop.f32.mrf.mxu0 }
 0x9b6   :  { %v1449_v50 = vpack.c.bf16 %v1446_v44, %v1414_v46 }
 0x9b8   :  { %2022 = vmatmul.msk.bf16.vlgmr.msra.gmra.mxu2 %vm230_vm1, %v1449_v50 }
 0x9bd   :  { %v1543_v35 = vpop.f32.mrf.mxu0 }
 0x9be   :  { %v1549_v51 = vsel %vm295_vm2, %v1543_v35, -inf }
 0x9bf   :  { %1550 = vmax.xlane.f32.xlu2 %v1549_v51 }
 0x9c8   :  { %v1258_v55 = vpop.f32.mrf.mxu1  ;;  %2037 = vmatmul.msk.f32.vlgmr.msrb.gmra.mxu2 %vm230_vm1, %v1684_v53 }
 0x9c9   :  { %v1263_v13 = vadd.f32 %v1258_v55, %v2791_v48 }
 0x9d0   :  { %v1260_v56 = vpop.f32.mrf.mxu1 }
 0x9d1   :  { %v1264_v57 = vadd.f32 %v1260_v56, %v2799_v12  ;;  %v1752_v47 = vpop.f32.mrf.mxu0 }
 0x9d2   :  { %v1758_v60 = vsel %vm295_vm2, %v1752_v47, -inf }
 0x9d3   :  { %1759 = vmax.xlane.f32.xlu0 %v1758_v60 }
 0x9d8   :  { %v1507_v26 = vpop.f32.mrf.mxu1 }
 0x9d9   :  { %v1546_v58 = vsel %vm295_vm2, %v1507_v26, -inf }
 0x9da   :  { %1547 = vmax.xlane.f32.xlu1 %v1546_v58 }
 0xa32   :  { %v1551_v62 = vpop.xlane.xlu2 %1550 }
 0xa33   :  { %v1553_v1 = vsub.f32 %v1543_v35, %v1551_v62 }
 0xa35   :  { %v1556_v4 = vmul.f32 1.442695, %v1553_v1 }
 0xa37   :  { %2235 = vpow2.f32 %v1556_v4 }
 0xa3b   :  { %v1467_v20 = vpop.f32.mrf.mxu2 }
 0xa3c   :  { %v2923_v6 = vadd.f32 %v1467_v20, %v1263_v13 }
 0xa3d   :  { %v2925_v5 = vpop.eup %2235 }
 0xa3e   :  { %v1561_v48 = vsel %vm295_vm2, %v2925_v5, 0.0 }
 0xa3f   :  { %1562 = vadd.xlane.f32.xlu0 %v1561_v48 }
 0xa43   :  { %v1469_v12 = vpop.f32.mrf.mxu2 }
 0xa44   :  { %v2929_v40 = vadd.f32 %v1469_v12, %v1264_v57 }
 0xa46   :  { %v1760_v28 = vpop.xlane.xlu0 %1759 }
 0xa47   :  { %v1762_v45 = vsub.f32 %v1752_v47, %v1760_v28 }
 0xa49   :  { %v1765_v18 = vmul.f32 1.442695, %v1762_v45 }
 0xa4b   :  { %2237 = vpow2.f32 %v1765_v18  ;;  %v1716_v7 = vpop.f32.mrf.mxu2 }
 0xa4c   :  { %v1755_v8 = vsel %vm295_vm2, %v1716_v7, -inf }
 0xa4d   :  { %1756 = vmax.xlane.f32.xlu1 %v1755_v8  ;;  %v1548_v49 = vpop.xlane.xlu1 %1547 }
 0xa4e   :  { %v1552_v9 = vsub.f32 %v1507_v26, %v1548_v49 }
 0xa50   :  { %v1554_v10 = vmul.f32 1.442695, %v1552_v9 }
 0xa51   :  { %v2932_v59 = vpop.eup %2237 }
 0xa52   :  { %2239 = vpow2.f32 %v1554_v10  ;;  %v1770_v14 = vsel %vm295_vm2, %v2932_v59, 0.0 }
 0xa53   :  { %2157 = vrot.lane.b32.xlu0 %v2502_v21, %s2424_s1 }
 0xa55   :  { %1771 = vadd.xlane.f32.xlu1 %v1770_v14 }
 0xa58   :  { %v2240_v11 = vpop.eup %2239 }
 0xa59   :  { %v1558_v19 = vsel %vm295_vm2, %v2240_v11, 0.0 }
 0xa5a   :  { %1559 = vadd.xlane.f32.xlu2 %v1558_v19 }
 0xa5b   :  { %2172 = vrot.lane.b32.xlu0 %v2554_v41, %s2405_s27 }
 0xa63   :  { %2182 = vrot.lane.b32.xlu0 %v2879_v3, %s2405_s27 }
 0xa6e   :  { %2162 = vrot.lane.b32.xlu1 %v2567_v54, %s2424_s1 }
 0xa76   :  { %2177 = vrot.lane.b32.xlu1 %v2810_v61, %s2405_s27 }
 0xab2   :  { %v2947_v21 = vpop.xlane.xlu0 %1562 }
 0xab3   :  { %vm1584_vm13 = vweird.f32 %v2947_v21  ;;  %v1588_v12 = vand.u32 2147483647, %v2947_v21 }
 0xab5   :  { %vm1589_vm15 = vcmp.eq.f32.partialorder %v1588_v12, 8.507059e+37 }
 0xac0   :  { %v1757_v24 = vpop.xlane.xlu1 %1756 }
 0xac1   :  { %v1761_v15 = vsub.f32 %v1716_v7, %v1757_v24 }
 0xac3   :  { %v1763_v16 = vmul.f32 1.442695, %v1761_v15 }
 0xac5   :  { %2241 = vpow2.f32 %v1763_v16  ;;  %v2158_v17 = vpop.permute.xlu0 %2157 }
 0xac6   :  { %v2159_v22 = vunpack.i.l.bf16 %v2158_v17  ;;  %v2160_v27 = vunpack.i.h.bf16 %v2158_v17 }
 0xac8   :  { %1619 = vmatpush.msra.mxu3 %v2159_v22  ;;  %v1772_v41 = vpop.xlane.xlu1 %1771 }
 0xac9   :  { %2243 = vrcp.f32 %v1772_v41  ;;  %v1799_v50 = vand.u32 2147483648, %v1772_v41  ;;  %vm1793_vm9 = vweird.f32 %v1772_v41  ;;  %v1797_v53 = vand.u32 2147483647, %v1772_v41 }
 0xaca   :  { %1620 = vmatpush.msra.mxu3 %v2160_v27  ;;  %v1660_v27 = vld [vmem:[#allocation10 + $0x18] sm:$0xf] }
 0xacb   :  { %v2949_v29 = vpop.eup %2241  ;;  %v1800_v56 = vor.u32 1.1754944e-38, %v1799_v50  ;;  %vm1798_vm11 = vcmp.eq.f32.partialorder %v1797_v53, 8.507059e+37 }
 0xacc   :  { %v1767_v54 = vsel %vm295_vm2, %v2949_v29, 0.0 }
 0xacd   :  { %v2173_v3 = vpop.permute.xlu0 %2172  ;;  %v1560_v61 = vpop.xlane.xlu2 %1559  ;;  %1768 = vadd.xlane.f32.xlu2 %v1767_v54  ;;  %v1665_v54 = vsel %vm600_vm7, %v1660_v27, 0 }
 0xace   :  { %v2174_v30 = vunpack.i.l.bf16 %v2173_v3  ;;  %2245 = vrcp.f32 %v1560_v61  ;;  %v2175_v31 = vunpack.i.h.bf16 %v2173_v3  ;;  %v1575_v0 = vand.u32 2147483648, %v1560_v61 }
 0xacf   :  { %v2244_v25 = vpop.eup %2243  ;;  %v1573_v37 = vand.u32 2147483647, %v1560_v61  ;;  %vm1569_vm4 = vweird.f32 %v1560_v61  ;;  %2247 = vrcp.f32 %v2947_v21 }
 0xad0   :  { %1860 = vmatpush.msra.mxu2 %v2174_v30  ;;  %v1789_v32 = vmul.f32 %v2244_v25, %v1772_v41  ;;  %v1576_v52 = vor.u32 1.1754944e-38, %v1575_v0  ;;  %vm1794_vm8 = vweird.f32 %v2244_v25  ;;  %v1869_v30 = vld [vmem:[#allocation10 + $0x1c] sm:$0xf] }
 0xad1   :  { %vm1574_vm6 = vcmp.eq.f32.partialorder %v1573_v37, 8.507059e+37  ;;  %vm1795_vm10 = vmor %vm1793_vm9, %vm1794_vm8 }
 0xad2   :  { %1861 = vmatpush.msra.mxu2 %v2175_v31  ;;  %v1790_v63 = vsub.f32 1.0, %v1789_v32  ;;  %v1874_v31 = vsel %vm600_vm7, %v1869_v30, 0 }
 0xad3   :  { %1883 = vmatpush.bf16.msrb.mxu0 %v1874_v31 }
 0xad4   :  { %v2246_v23 = vpop.eup %2245  ;;  %v1791_v39 = vmul.f32 %v2244_v25, %v1790_v63 }
 0xad5   :  { %v1565_v33 = vmul.f32 %v2246_v23, %v1560_v61  ;;  %vm1570_vm3 = vweird.f32 %v2246_v23  ;;  %v2248_v58 = vpop.eup %2247 }
 0xad6   :  { %vm1571_vm5 = vmor %vm1569_vm4, %vm1570_vm3  ;;  %v1792_v44 = vadd.f32 %v2244_v25, %v1791_v39  ;;  %v1580_v62 = vmul.f32 %v2248_v58, %v2947_v21  ;;  %vm1585_vm12 = vweird.f32 %v2248_v58 }
 0xad7   :  { %v1566_v34 = vsub.f32 1.0, %v1565_v33  ;;  %vm1586_vm14 = vmor %vm1584_vm13, %vm1585_vm12 }
 0xad8   :  { %v1796_v13 = vsel %vm1795_vm10, %v2244_v25, %v1792_v44  ;;  %v1581_v1 = vsub.f32 1.0, %v1580_v62 }
 0xad9   :  { %v1567_v36 = vmul.f32 %v2246_v23, %v1566_v34  ;;  %v1801_v57 = vsel %vm1798_vm11, %v1800_v56, %v1796_v13 }
 0xada   :  { %v1802_v26 = vmul.f32 %v2932_v59, %v1801_v57  ;;  %v1582_v4 = vmul.f32 %v2248_v58, %v1581_v1 }
 0xadb   :  { %v1568_v38 = vadd.f32 %v2246_v23, %v1567_v36 }
 0xadc   :  { %v1583_v48 = vadd.f32 %v2248_v58, %v1582_v4 }
 0xadd   :  { %v1572_v42 = vsel %vm1571_vm5, %v2246_v23, %v1568_v38 }
 0xade   :  { %v1577_v43 = vsel %vm1574_vm6, %v1576_v52, %v1572_v42  ;;  %v1587_v28 = vsel %vm1586_vm14, %v2248_v58, %v1583_v48 }
 0xadf   :  { %v1578_v55 = vmul.f32 %v2240_v11, %v1577_v43  ;;  %v2183_v11 = vpop.permute.xlu0 %2182 }
 0xae0   :  { %v2163_v46 = vpop.permute.xlu1 %2162  ;;  %v2184_v17 = vunpack.i.l.bf16 %v2183_v11  ;;  %v2185_v3 = vunpack.i.h.bf16 %v2183_v11 }
 0xae1   :  { %v2165_v35 = vunpack.i.h.bf16 %v2163_v46  ;;  %v2164_v51 = vunpack.i.l.bf16 %v2163_v46 }
 0xae3   :  { %1621 = vmatpush.msra.mxu3 %v2164_v51  ;;  %1651 = vmatpush.msrb.mxu1 %v2165_v35 }
 0xae4   :  { %2031 = vmatmul.msk.f32.vlgmr.msra.gmra.mxu3 %vm295_vm2, %v1578_v55 }
 0xae5   :  { %2167 = vrot.lane.b32.xlu2 %v2636_v2, %s2424_s1  ;;  %v1590_v2 = vand.u32 2147483648, %v2947_v21  ;;  %1674 = vmatpush.bf16.msrb.mxu3 %v1665_v54 }
 0xae7   :  { %v1591_v18 = vor.u32 1.1754944e-38, %v1590_v2 }
 0xae8   :  { %v2178_v47 = vpop.permute.xlu1 %2177 }
 0xae9   :  { %v2179_v60 = vunpack.i.l.bf16 %v2178_v47  ;;  %v1592_v49 = vsel %vm1589_vm15, %v1591_v18, %v1587_v28  ;;  %v2180_v21 = vunpack.i.h.bf16 %v2178_v47 }
 0xaea   :  { %v1593_v15 = vmul.f32 %v2925_v5, %v1592_v49 }
 0xaeb   :  { %1862 = vmatpush.msra.mxu2 %v2179_v60 }
 0xaec   :  { %2043 = vmatmul.msk.f32.vlgmr.msra.gmra.mxu2 %vm295_vm2, %v1802_v26 }
 0xb40   :  { %v1769_v20 = vpop.xlane.xlu2 %1768 }
 0xb41   :  { %2249 = vrcp.f32 %v1769_v20  ;;  %v1784_v59 = vand.u32 2147483648, %v1769_v20  ;;  %v1782_v24 = vand.u32 2147483647, %v1769_v20  ;;  %vm1778_vm4 = vweird.f32 %v1769_v20 }
 0xb43   :  { %v1785_v22 = vor.u32 1.1754944e-38, %v1784_v59  ;;  %vm1783_vm6 = vcmp.eq.f32.partialorder %v1782_v24, 8.507059e+37 }
 0xb47   :  { %v2250_v45 = vpop.eup %2249 }
 0xb48   :  { %v1774_v7 = vmul.f32 %v2250_v45, %v1769_v20  ;;  %v2168_v8 = vpop.permute.xlu2 %2167  ;;  %vm1779_vm3 = vweird.f32 %v2250_v45 }
 0xb49   :  { %v2169_v9 = vunpack.i.l.bf16 %v2168_v8  ;;  %v2170_v14 = vunpack.i.h.bf16 %v2168_v8  ;;  %vm1780_vm5 = vmor %vm1778_vm4, %vm1779_vm3 }
 0xb4a   :  { %v1775_v10 = vsub.f32 1.0, %v1774_v7 }
 0xb4b   :  { %1652 = vmatpush.msrb.mxu1 %v2169_v9 }
 0xb4c   :  { %v1776_v19 = vmul.f32 %v2250_v45, %v1775_v10 }
 0xb4d   :  { %1653 = vmatpush.msrb.mxu1 %v2170_v14 }
 0xb4e   :  { %v1777_v16 = vadd.f32 %v2250_v45, %v1776_v19  ;;  %2032 = vmatmul.msk.f32.vlgmr.msrb.gmra.mxu1 %vm295_vm2, %v1593_v15 }
 0xb4f   :  { %1828 = vmatpush.msra.mxu1 %v2180_v21 }
 0xb50   :  { %v1781_v41 = vsel %vm1780_vm5, %v2250_v45, %v1777_v16 }
 0xb51   :  { %v1786_v61 = vsel %vm1783_vm6, %v1785_v22, %v1781_v41  ;;  %1829 = vmatpush.msra.mxu1 %v2184_v17 }
 0xb52   :  { %v1787_v5 = vmul.f32 %v2949_v29, %v1786_v61  ;;  %v2186_v29 = vld [vmem:[%s2989_s5] ss:$0 sm:$0xff] }
 0xb53   :  { %1830 = vmatpush.msra.mxu1 %v2185_v3 }
 0xb56   :  { %2042 = vmatmul.msk.f32.vlgmr.msra.gmra.mxu1 %vm295_vm2, %v1787_v5 }
 0xb67   :  { %v1623_v25 = vpop.f32.mrf.mxu3 }
 0xb6f   :  { %v1864_v33 = vpop.f32.mrf.mxu2 }
 0xbcb   :  { %v1655_v23 = vpop.f32.mrf.mxu1 }
 0xbcc   :  { %v1658_v32 = vpack.c.bf16 %v1655_v23, %v1623_v25 }
 0xbce   :  { %2033 = vmatmul.msk.bf16.vlgmr.msrb.gmra.mxu3 %vm230_vm1, %v1658_v32 }
 0xbd3   :  { %v1832_v34 = vpop.f32.mrf.mxu1 }
 0xbd4   :  { %v1867_v63 = vpack.c.bf16 %v1864_v33, %v1832_v34 }
 0xbd6   :  { %2044 = vmatmul.msk.bf16.vlgmr.msrb.gmra.mxu0 %vm230_vm1, %v1867_v63 }
 0xc51   :  { %v1676_v36 = vpop.f32.mrf.mxu3 }
 0xc52   :  { %v1681_v0 = vadd.f32 %v1676_v36, %v2923_v6 }
 0xc53   :  { %v1885_v37 = vpop.f32.mrf.mxu0 }
 0xc54   :  { %v1890_v38 = vadd.f32 %v1885_v37, %v1681_v0 }
 0xc56   :  { %v1896_v39 = vadd.f32 %v2186_v29, %v1890_v38 }
 0xc58   :  { %1898 = vst.msk [vmem:[#allocation11] sm:$0xff] %vm142_vm0, %v1896_v39 }
 0xc59   :  { %v1678_v42 = vpop.f32.mrf.mxu3 }
 0xc5a   :  { %v1682_v52 = vadd.f32 %v1678_v42, %v2929_v40 }
 0xc5b   :  { %v1887_v43 = vpop.f32.mrf.mxu0 }
 0xc5c   :  { %v1891_v6 = vadd.f32 %v1887_v43, %v1682_v52 }
 0xc5e   :  { %v1897_v44 = vadd.f32 %v2186_v29, %v1891_v6 }
 0xc60   :  { %1899 = vst.msk [vmem:[#allocation11 + $0x8] sm:$0xff] %vm142_vm0, %v1897_v44 }
 0xc61   :  { %1912 = dma.vmem_to_hbm [thread:$0]  %s1905_s14, 256, %s1907_s3, [#allocation4], %s2404_s26, %s2404_s26, %s2405_s27  }
 0xc62   :  { %2401 = dma.done.wait [#allocation4], 256  }
 0xc63   :  { %2402 = vsyncadd [#allocation4], 4294967040 }
 0xc64   :  { %1917 = vsyncpa [#allocation3], 1 }
 0xc65   :  { %1918 = vsyncpa [#allocation6], 1 }
 0xc66   :  { %1919 = vsyncpa [#allocation9], 1 }
 0xc67   :  { %1920 = vsyncpa [#allocation4], 1 }

</bundles_post_ra>
